<compile_context>
chip_gen: v5e
topology: v5e:2x2
jax: 0.10.0
libtpu: 0.0.40
codegen_flags: <defaults>
</compile_context>

<pallas_src>
import functools

import jax
import jax.numpy as jnp
import numpy as np
from jax.experimental import pallas as pl
from jax.experimental.pallas import tpu as pltpu


# ----------------------------- fused Pallas kernel ---------------------------

def _disc_kernel(*refs, layers, num_inputs, eps, slope):
    """Whole-discriminator forward in a single kernel.

    refs = [x2d, (L, R[, M1]) per conv layer ..., w_head, b_head, out]
      x2d : (H*N, W*C)          input activation, f32 (flattened NHWC)
      L   : (4, Ho*N, H*N)      bf16 row-selection operands (one per kh)
      R   : (4, W*Cin, Wo*Cout) bf16 weight operands
      M1  : (Wo*Cout, Wo*Cout)  f32 per-channel averaging matrix (BN layers)
      w_head : (F, 1) f32, b_head : (1, 1) f32
      out : (N, 1) f32
    """
    in_refs = refs[:num_inputs]
    o_ref = refs[num_inputs]

    act = in_refs[0][...]                                    # (H*N, W*C) f32
    for (l_idx, r_idx, m1_idx) in layers:
        l_ref = in_refs[l_idx]
        r_ref = in_refs[r_idx]
        a16 = act.astype(jnp.bfloat16)                       # bf16 MXU operands
        acc = None
        for kh in range(4):                                  # unrolled: 8 GEMMs/conv
            rows = jnp.dot(l_ref[kh], a16,                   # (Ho*N, W*Cin) f32
                           preferred_element_type=jnp.float32)
            part = jnp.dot(rows.astype(jnp.bfloat16), r_ref[kh],
                           preferred_element_type=jnp.float32)
            acc = part if acc is None else acc + part        # (Ho*N, Wo*Cout) f32
        if m1_idx is not None:
            # Training-mode BatchNorm2d (gamma=1, beta=0, biased batch stats).
            # Columns are (wo, cout) interleaved; M1 averages each channel's
            # row-sums over the wo groups and broadcasts the result back.
            m1 = in_refs[m1_idx][...]
            mean = jnp.dot(jnp.sum(acc, axis=0, keepdims=True), m1,
                           preferred_element_type=jnp.float32)
            d = acc - mean
            var = jnp.dot(jnp.sum(d * d, axis=0, keepdims=True), m1,
                          preferred_element_type=jnp.float32)
            acc = d * jax.lax.rsqrt(var + eps)
        act = jnp.where(acc >= 0.0, acc, slope * acc)        # LeakyReLU(0.2)

    # Spectral-normed Linear(F -> 1) + numerically stable sigmoid.
    w = in_refs[num_inputs - 2][...]                         # (F, 1)
    b = in_refs[num_inputs - 1][...]                         # (1, 1)
    z = jnp.dot(act, w, preferred_element_type=jnp.float32) + b
    e = jnp.exp(jnp.where(z >= 0.0, -z, z))                  # exp of non-positive arg
    o_ref[...] = jnp.where(z >= 0.0, 1.0 / (1.0 + e), e / (1.0 + e))


# --------------------- parameter / GEMM-operand construction -----------------

def _conv_operands(weight, *, N, H, W, stride):
    """Build the per-kh (L, R) GEMM operands of a 4x4 / pad=1 conv so that
    y = sum_kh (L_kh @ A) @ R_kh on the (H*N, W*Cin) activation layout."""
    cout, cin = int(weight.shape[0]), int(weight.shape[1])
    Ho = (H + 2 - 4) // stride + 1
    Wo = (W + 2 - 4) // stride + 1
    w_np = np.asarray(weight, np.float32)
    Ls, Rs = [], []
    for kh in range(4):
        lsel = np.zeros((Ho, H), np.float32)
        for ho in range(Ho):
            h = stride * ho + kh - 1                         # -1 == zero padding
            if 0 <= h < H:
                lsel[ho, h] = 1.0
        Ls.append(np.kron(lsel, np.eye(N, dtype=np.float32)))
        r = np.zeros((W * cin, Wo * cout), np.float32)
        for kw in range(4):
            wmat = w_np[:, :, kh, kw].T                      # (cin, cout)
            for wo in range(Wo):
                w_in = stride * wo + kw - 1
                if 0 <= w_in < W:
                    r[w_in * cin:(w_in + 1) * cin,
                      wo * cout:(wo + 1) * cout] += wmat
        Rs.append(r)
    L = jnp.asarray(np.stack(Ls), jnp.bfloat16)              # (4, Ho*N, H*N)
    R = jnp.asarray(np.stack(Rs), jnp.bfloat16)              # (4, W*cin, Wo*cout)
    return L, R, Ho, Wo


def build_discriminator(key, *, channels, img_size, ndf, batch):
    """Synthetic parameters mirroring the PyTorch module, pre-flattened into
    the GEMM operands consumed by the fused kernel (built once, per review)."""
    num_down = int(np.log2(img_size) - np.log2(2))
    weights, layers = [], []

    def push(arr):
        weights.append(arr)
        return len(weights)                   # kernel in_refs index (x2d is 0)

    in_ch, H, W = channels, img_size, img_size
    for i in range(num_down):
        out_ch = max(int(ndf * 2 ** (i - num_down + 1)), 4)
        key, k1, k2 = jax.random.split(key, 3)
        w1 = 0.1 * jax.random.normal(k1, (out_ch, in_ch, 4, 4), jnp.float32)
        w2 = 0.1 * jax.random.normal(k2, (out_ch, out_ch, 4, 4), jnp.float32)
        # Conv2d(k=4, s=1, p=1, bias=False) + LeakyReLU(0.2)
        L, R, H, W = _conv_operands(w1, N=batch, H=H, W=W, stride=1)
        layers.append((push(L), push(R), None))
        # Conv2d(k=4, s=2, p=1, bias=False) + [BatchNorm2d if i>0] + LeakyReLU
        L, R, H, W = _conv_operands(w2, N=batch, H=H, W=W, stride=2)
        li, ri = push(L), push(R)
        mi = None
        if i > 0:
            m1 = np.kron(np.ones((W, W), np.float32),
                         np.eye(out_ch, dtype=np.float32)) / float(batch * H * W)
            mi = push(jnp.asarray(m1, jnp.float32))
        layers.append((li, ri, mi))
        in_ch = out_ch

    final_dim = ndf                           # final_conv_dim(=1) * ndf
    assert H == 1 and W == 1 and in_ch == final_dim

    key, kl, kb = jax.random.split(key, 3)
    limit = float(np.sqrt(6.0 / (1 + final_dim)))            # xavier_uniform(gain=1)
    wl = jax.random.uniform(kl, (1, final_dim), jnp.float32, -limit, limit)
    wl = wl / jnp.linalg.norm(wl)             # spectral norm of a 1-row weight == ||w||_2
    bound = 1.0 / float(np.sqrt(final_dim))
    bl = jax.random.uniform(kb, (1, 1), jnp.float32, -bound, bound)
    push(jnp.asarray(wl.T, jnp.float32))      # (final_dim, 1)
    push(bl)                                  # (1, 1)
    return tuple(weights), tuple(layers)


# ------------------------------- forward wrapper ------------------------------

def make_forward(layers, num_weights, *, batch, channels, img_size):
    num_inputs = 1 + num_weights
    kernel = functools.partial(_disc_kernel, layers=layers,
                               num_inputs=num_inputs, eps=1e-5, slope=0.2)
    call = pl.pallas_call(
        kernel,
        out_shape=jax.ShapeDtypeStruct((batch, 1), jnp.float32),
        in_specs=[pl.BlockSpec(memory_space=pltpu.MemorySpace.VMEM)
                  for _ in range(num_inputs)],
        out_specs=pl.BlockSpec(memory_space=pltpu.MemorySpace.VMEM),
        # No grid: the entire working set (<1 MiB) is VMEM-resident.  At
        # realistic batch/img_size this would become a "parallel" grid over
        # the activation-row dimension (v7x: 2 TCs, 64 MiB VMEM budget).
    )

    @jax.jit
    def forward(x, weights):
        x = x.reshape(-1, channels, img_size, img_size)      # = x.view(-1, C, S, S)
        # NCHW -> flattened-NHWC 2-D layout A[h*N+n, w*C+c] (layout plumbing
        # done once in the wrapper; everything downstream stays in-kernel).
        x2d = x.transpose(2, 0, 3, 1).reshape(img_size * batch,
                                              img_size * channels)
        return call(x2d, *weights)

    return forward


# ------------------------------------ demo ------------------------------------

if __name__ == "__main__":
    channels, img_size, ndf, batch = 4, 16, 32, 2

    key = jax.random.PRNGKey(0)
    key, kx = jax.random.split(key)
    x = jax.random.normal(kx, (batch, channels, img_size, img_size), jnp.float32)

    weights, layers = build_discriminator(
        key, channels=channels, img_size=img_size, ndf=ndf, batch=batch)
    forward = make_forward(layers, len(weights), batch=batch,
                           channels=channels, img_size=img_size)

    out = jax.block_until_ready(forward(x, weights))

    assert out.shape == (batch, 1), out.shape
    assert bool(jnp.all(jnp.isfinite(out)))
    assert bool(jnp.all((out >= 0.0) & (out <= 1.0)))        # sigmoid output range
    print("KERNEL_OK")
</pallas_src>

<mosaic_0001>
module attributes {stable_mosaic.version = 11 : i64} {
  func.func @_disc_kernel(%arg0: memref<32x64xf32, #tpu.memory_space<vmem>>, %arg1: memref<4x30x32xbf16, #tpu.memory_space<vmem>>, %arg2: memref<4x64x120xbf16, #tpu.memory_space<vmem>>, %arg3: memref<4x14x30xbf16, #tpu.memory_space<vmem>>, %arg4: memref<4x120x56xbf16, #tpu.memory_space<vmem>>, %arg5: memref<4x12x14xbf16, #tpu.memory_space<vmem>>, %arg6: memref<4x56x96xbf16, #tpu.memory_space<vmem>>, %arg7: memref<4x6x12xbf16, #tpu.memory_space<vmem>>, %arg8: memref<4x96x48xbf16, #tpu.memory_space<vmem>>, %arg9: memref<48x48xf32, #tpu.memory_space<vmem>>, %arg10: memref<4x4x6xbf16, #tpu.memory_space<vmem>>, %arg11: memref<4x48x64xbf16, #tpu.memory_space<vmem>>, %arg12: memref<4x2x4xbf16, #tpu.memory_space<vmem>>, %arg13: memref<4x64x32xbf16, #tpu.memory_space<vmem>>, %arg14: memref<32x32xf32, #tpu.memory_space<vmem>>, %arg15: memref<32x1xf32, #tpu.memory_space<vmem>>, %arg16: memref<1x1xf32, #tpu.memory_space<vmem>>, %arg17: memref<2x1xf32, #tpu.memory_space<vmem>>) attributes {dimension_semantics = [], scalar_prefetch = 0 : i64, scratch_operands = 0 : i64, tpu.core_type = #tpu.core_type<tc>} {
    %c0 = arith.constant 0 : index
    %c0_0 = arith.constant 0 : index
    %0 = vector.load %arg0[%c0, %c0_0] : memref<32x64xf32, #tpu.memory_space<vmem>>, vector<32x64xf32>
    %1 = arith.truncf %0 : vector<32x64xf32> to vector<32x64xbf16>
    %c0_1 = arith.constant 0 : index
    %c0_2 = arith.constant 0 : index
    %c0_3 = arith.constant 0 : index
    %2 = vector.load %arg1[%c0_1, %c0_2, %c0_3] : memref<4x30x32xbf16, #tpu.memory_space<vmem>>, vector<1x30x32xbf16>
    %3 = vector.shape_cast %2 : vector<1x30x32xbf16> to vector<30x32xbf16>
    %cst = arith.constant dense<0.000000e+00> : vector<30x64xf32>
    %4 = tpu.matmul %3, %1, %cst {dimension_numbers = #tpu.dot_dimension_numbers<[1], [0], [0], [1], [0, 0, 1, 1], [], []>} : vector<30x32xbf16>, vector<32x64xbf16>, vector<30x64xf32> -> vector<30x64xf32>
    %5 = arith.truncf %4 : vector<30x64xf32> to vector<30x64xbf16>
    %c0_4 = arith.constant 0 : index
    %c0_5 = arith.constant 0 : index
    %c0_6 = arith.constant 0 : index
    %6 = vector.load %arg2[%c0_4, %c0_5, %c0_6] : memref<4x64x120xbf16, #tpu.memory_space<vmem>>, vector<1x64x120xbf16>
    %7 = vector.shape_cast %6 : vector<1x64x120xbf16> to vector<64x120xbf16>
    %cst_7 = arith.constant dense<0.000000e+00> : vector<30x120xf32>
    %8 = tpu.matmul %5, %7, %cst_7 {dimension_numbers = #tpu.dot_dimension_numbers<[1], [0], [0], [1], [0, 0, 1, 1], [], []>} : vector<30x64xbf16>, vector<64x120xbf16>, vector<30x120xf32> -> vector<30x120xf32>
    %c1 = arith.constant 1 : index
    %c0_8 = arith.constant 0 : index
    %c0_9 = arith.constant 0 : index
    %9 = vector.load %arg1[%c1, %c0_8, %c0_9] : memref<4x30x32xbf16, #tpu.memory_space<vmem>>, vector<1x30x32xbf16>
    %10 = vector.shape_cast %9 : vector<1x30x32xbf16> to vector<30x32xbf16>
    %cst_10 = arith.constant dense<0.000000e+00> : vector<30x64xf32>
    %11 = tpu.matmul %10, %1, %cst_10 {dimension_numbers = #tpu.dot_dimension_numbers<[1], [0], [0], [1], [0, 0, 1, 1], [], []>} : vector<30x32xbf16>, vector<32x64xbf16>, vector<30x64xf32> -> vector<30x64xf32>
    %12 = arith.truncf %11 : vector<30x64xf32> to vector<30x64xbf16>
    %c1_11 = arith.constant 1 : index
    %c0_12 = arith.constant 0 : index
    %c0_13 = arith.constant 0 : index
    %13 = vector.load %arg2[%c1_11, %c0_12, %c0_13] : memref<4x64x120xbf16, #tpu.memory_space<vmem>>, vector<1x64x120xbf16>
    %14 = vector.shape_cast %13 : vector<1x64x120xbf16> to vector<64x120xbf16>
    %cst_14 = arith.constant dense<0.000000e+00> : vector<30x120xf32>
    %15 = tpu.matmul %12, %14, %cst_14 {dimension_numbers = #tpu.dot_dimension_numbers<[1], [0], [0], [1], [0, 0, 1, 1], [], []>} : vector<30x64xbf16>, vector<64x120xbf16>, vector<30x120xf32> -> vector<30x120xf32>
    %16 = arith.addf %8, %15 : vector<30x120xf32>
    %c2 = arith.constant 2 : index
    %c0_15 = arith.constant 0 : index
    %c0_16 = arith.constant 0 : index
    %17 = vector.load %arg1[%c2, %c0_15, %c0_16] : memref<4x30x32xbf16, #tpu.memory_space<vmem>>, vector<1x30x32xbf16>
    %18 = vector.shape_cast %17 : vector<1x30x32xbf16> to vector<30x32xbf16>
    %cst_17 = arith.constant dense<0.000000e+00> : vector<30x64xf32>
    %19 = tpu.matmul %18, %1, %cst_17 {dimension_numbers = #tpu.dot_dimension_numbers<[1], [0], [0], [1], [0, 0, 1, 1], [], []>} : vector<30x32xbf16>, vector<32x64xbf16>, vector<30x64xf32> -> vector<30x64xf32>
    %20 = arith.truncf %19 : vector<30x64xf32> to vector<30x64xbf16>
    %c2_18 = arith.constant 2 : index
    %c0_19 = arith.constant 0 : index
    %c0_20 = arith.constant 0 : index
    %21 = vector.load %arg2[%c2_18, %c0_19, %c0_20] : memref<4x64x120xbf16, #tpu.memory_space<vmem>>, vector<1x64x120xbf16>
    %22 = vector.shape_cast %21 : vector<1x64x120xbf16> to vector<64x120xbf16>
    %cst_21 = arith.constant dense<0.000000e+00> : vector<30x120xf32>
    %23 = tpu.matmul %20, %22, %cst_21 {dimension_numbers = #tpu.dot_dimension_numbers<[1], [0], [0], [1], [0, 0, 1, 1], [], []>} : vector<30x64xbf16>, vector<64x120xbf16>, vector<30x120xf32> -> vector<30x120xf32>
    %24 = arith.addf %16, %23 : vector<30x120xf32>
    %c3 = arith.constant 3 : index
    %c0_22 = arith.constant 0 : index
    %c0_23 = arith.constant 0 : index
    %25 = vector.load %arg1[%c3, %c0_22, %c0_23] : memref<4x30x32xbf16, #tpu.memory_space<vmem>>, vector<1x30x32xbf16>
    %26 = vector.shape_cast %25 : vector<1x30x32xbf16> to vector<30x32xbf16>
    %cst_24 = arith.constant dense<0.000000e+00> : vector<30x64xf32>
    %27 = tpu.matmul %26, %1, %cst_24 {dimension_numbers = #tpu.dot_dimension_numbers<[1], [0], [0], [1], [0, 0, 1, 1], [], []>} : vector<30x32xbf16>, vector<32x64xbf16>, vector<30x64xf32> -> vector<30x64xf32>
    %28 = arith.truncf %27 : vector<30x64xf32> to vector<30x64xbf16>
    %c3_25 = arith.constant 3 : index
    %c0_26 = arith.constant 0 : index
    %c0_27 = arith.constant 0 : index
    %29 = vector.load %arg2[%c3_25, %c0_26, %c0_27] : memref<4x64x120xbf16, #tpu.memory_space<vmem>>, vector<1x64x120xbf16>
    %30 = vector.shape_cast %29 : vector<1x64x120xbf16> to vector<64x120xbf16>
    %cst_28 = arith.constant dense<0.000000e+00> : vector<30x120xf32>
    %31 = tpu.matmul %28, %30, %cst_28 {dimension_numbers = #tpu.dot_dimension_numbers<[1], [0], [0], [1], [0, 0, 1, 1], [], []>} : vector<30x64xbf16>, vector<64x120xbf16>, vector<30x120xf32> -> vector<30x120xf32>
    %32 = arith.addf %24, %31 : vector<30x120xf32>
    %cst_29 = arith.constant 0.000000e+00 : f32
    %33 = vector.broadcast %cst_29 : f32 to vector<30x120xf32>
    %34 = arith.cmpf oge, %32, %33 : vector<30x120xf32>
    %cst_30 = arith.constant 2.000000e-01 : f32
    %35 = vector.broadcast %cst_30 : f32 to vector<30x120xf32>
    %36 = arith.mulf %35, %32 : vector<30x120xf32>
    %37 = arith.select %34, %32, %36 : vector<30x120xi1>, vector<30x120xf32>
    %38 = arith.truncf %37 : vector<30x120xf32> to vector<30x120xbf16>
    %c0_31 = arith.constant 0 : index
    %c0_32 = arith.constant 0 : index
    %c0_33 = arith.constant 0 : index
    %39 = vector.load %arg3[%c0_31, %c0_32, %c0_33] : memref<4x14x30xbf16, #tpu.memory_space<vmem>>, vector<1x14x30xbf16>
    %40 = vector.shape_cast %39 : vector<1x14x30xbf16> to vector<14x30xbf16>
    %cst_34 = arith.constant dense<0.000000e+00> : vector<14x120xf32>
    %41 = tpu.matmul %40, %38, %cst_34 {dimension_numbers = #tpu.dot_dimension_numbers<[1], [0], [0], [1], [0, 0, 1, 1], [], []>} : vector<14x30xbf16>, vector<30x120xbf16>, vector<14x120xf32> -> vector<14x120xf32>
    %42 = arith.truncf %41 : vector<14x120xf32> to vector<14x120xbf16>
    %c0_35 = arith.constant 0 : index
    %c0_36 = arith.constant 0 : index
    %c0_37 = arith.constant 0 : index
    %43 = vector.load %arg4[%c0_35, %c0_36, %c0_37] : memref<4x120x56xbf16, #tpu.memory_space<vmem>>, vector<1x120x56xbf16>
    %44 = vector.shape_cast %43 : vector<1x120x56xbf16> to vector<120x56xbf16>
    %cst_38 = arith.constant dense<0.000000e+00> : vector<14x56xf32>
    %45 = tpu.matmul %42, %44, %cst_38 {dimension_numbers = #tpu.dot_dimension_numbers<[1], [0], [0], [1], [0, 0, 1, 1], [], []>} : vector<14x120xbf16>, vector<120x56xbf16>, vector<14x56xf32> -> vector<14x56xf32>
    %c1_39 = arith.constant 1 : index
    %c0_40 = arith.constant 0 : index
    %c0_41 = arith.constant 0 : index
    %46 = vector.load %arg3[%c1_39, %c0_40, %c0_41] : memref<4x14x30xbf16, #tpu.memory_space<vmem>>, vector<1x14x30xbf16>
    %47 = vector.shape_cast %46 : vector<1x14x30xbf16> to vector<14x30xbf16>
    %cst_42 = arith.constant dense<0.000000e+00> : vector<14x120xf32>
    %48 = tpu.matmul %47, %38, %cst_42 {dimension_numbers = #tpu.dot_dimension_numbers<[1], [0], [0], [1], [0, 0, 1, 1], [], []>} : vector<14x30xbf16>, vector<30x120xbf16>, vector<14x120xf32> -> vector<14x120xf32>
    %49 = arith.truncf %48 : vector<14x120xf32> to vector<14x120xbf16>
    %c1_43 = arith.constant 1 : index
    %c0_44 = arith.constant 0 : index
    %c0_45 = arith.constant 0 : index
    %50 = vector.load %arg4[%c1_43, %c0_44, %c0_45] : memref<4x120x56xbf16, #tpu.memory_space<vmem>>, vector<1x120x56xbf16>
    %51 = vector.shape_cast %50 : vector<1x120x56xbf16> to vector<120x56xbf16>
    %cst_46 = arith.constant dense<0.000000e+00> : vector<14x56xf32>
    %52 = tpu.matmul %49, %51, %cst_46 {dimension_numbers = #tpu.dot_dimension_numbers<[1], [0], [0], [1], [0, 0, 1, 1], [], []>} : vector<14x120xbf16>, vector<120x56xbf16>, vector<14x56xf32> -> vector<14x56xf32>
    %53 = arith.addf %45, %52 : vector<14x56xf32>
    %c2_47 = arith.constant 2 : index
    %c0_48 = arith.constant 0 : index
    %c0_49 = arith.constant 0 : index
    %54 = vector.load %arg3[%c2_47, %c0_48, %c0_49] : memref<4x14x30xbf16, #tpu.memory_space<vmem>>, vector<1x14x30xbf16>
    %55 = vector.shape_cast %54 : vector<1x14x30xbf16> to vector<14x30xbf16>
    %cst_50 = arith.constant dense<0.000000e+00> : vector<14x120xf32>
    %56 = tpu.matmul %55, %38, %cst_50 {dimension_numbers = #tpu.dot_dimension_numbers<[1], [0], [0], [1], [0, 0, 1, 1], [], []>} : vector<14x30xbf16>, vector<30x120xbf16>, vector<14x120xf32> -> vector<14x120xf32>
    %57 = arith.truncf %56 : vector<14x120xf32> to vector<14x120xbf16>
    %c2_51 = arith.constant 2 : index
    %c0_52 = arith.constant 0 : index
    %c0_53 = arith.constant 0 : index
    %58 = vector.load %arg4[%c2_51, %c0_52, %c0_53] : memref<4x120x56xbf16, #tpu.memory_space<vmem>>, vector<1x120x56xbf16>
    %59 = vector.shape_cast %58 : vector<1x120x56xbf16> to vector<120x56xbf16>
    %cst_54 = arith.constant dense<0.000000e+00> : vector<14x56xf32>
    %60 = tpu.matmul %57, %59, %cst_54 {dimension_numbers = #tpu.dot_dimension_numbers<[1], [0], [0], [1], [0, 0, 1, 1], [], []>} : vector<14x120xbf16>, vector<120x56xbf16>, vector<14x56xf32> -> vector<14x56xf32>
    %61 = arith.addf %53, %60 : vector<14x56xf32>
    %c3_55 = arith.constant 3 : index
    %c0_56 = arith.constant 0 : index
    %c0_57 = arith.constant 0 : index
    %62 = vector.load %arg3[%c3_55, %c0_56, %c0_57] : memref<4x14x30xbf16, #tpu.memory_space<vmem>>, vector<1x14x30xbf16>
    %63 = vector.shape_cast %62 : vector<1x14x30xbf16> to vector<14x30xbf16>
    %cst_58 = arith.constant dense<0.000000e+00> : vector<14x120xf32>
    %64 = tpu.matmul %63, %38, %cst_58 {dimension_numbers = #tpu.dot_dimension_numbers<[1], [0], [0], [1], [0, 0, 1, 1], [], []>} : vector<14x30xbf16>, vector<30x120xbf16>, vector<14x120xf32> -> vector<14x120xf32>
    %65 = arith.truncf %64 : vector<14x120xf32> to vector<14x120xbf16>
    %c3_59 = arith.constant 3 : index
    %c0_60 = arith.constant 0 : index
    %c0_61 = arith.constant 0 : index
    %66 = vector.load %arg4[%c3_59, %c0_60, %c0_61] : memref<4x120x56xbf16, #tpu.memory_space<vmem>>, vector<1x120x56xbf16>
    %67 = vector.shape_cast %66 : vector<1x120x56xbf16> to vector<120x56xbf16>
    %cst_62 = arith.constant dense<0.000000e+00> : vector<14x56xf32>
    %68 = tpu.matmul %65, %67, %cst_62 {dimension_numbers = #tpu.dot_dimension_numbers<[1], [0], [0], [1], [0, 0, 1, 1], [], []>} : vector<14x120xbf16>, vector<120x56xbf16>, vector<14x56xf32> -> vector<14x56xf32>
    %69 = arith.addf %61, %68 : vector<14x56xf32>
    %cst_63 = arith.constant 0.000000e+00 : f32
    %70 = vector.broadcast %cst_63 : f32 to vector<14x56xf32>
    %71 = arith.cmpf oge, %69, %70 : vector<14x56xf32>
    %cst_64 = arith.constant 2.000000e-01 : f32
    %72 = vector.broadcast %cst_64 : f32 to vector<14x56xf32>
    %73 = arith.mulf %72, %69 : vector<14x56xf32>
    %74 = arith.select %71, %69, %73 : vector<14x56xi1>, vector<14x56xf32>
    %75 = arith.truncf %74 : vector<14x56xf32> to vector<14x56xbf16>
    %c0_65 = arith.constant 0 : index
    %c0_66 = arith.constant 0 : index
    %c0_67 = arith.constant 0 : index
    %76 = vector.load %arg5[%c0_65, %c0_66, %c0_67] : memref<4x12x14xbf16, #tpu.memory_space<vmem>>, vector<1x12x14xbf16>
    %77 = vector.shape_cast %76 : vector<1x12x14xbf16> to vector<12x14xbf16>
    %cst_68 = arith.constant dense<0.000000e+00> : vector<12x56xf32>
    %78 = tpu.matmul %77, %75, %cst_68 {dimension_numbers = #tpu.dot_dimension_numbers<[1], [0], [0], [1], [0, 0, 1, 1], [], []>} : vector<12x14xbf16>, vector<14x56xbf16>, vector<12x56xf32> -> vector<12x56xf32>
    %79 = arith.truncf %78 : vector<12x56xf32> to vector<12x56xbf16>
    %c0_69 = arith.constant 0 : index
    %c0_70 = arith.constant 0 : index
    %c0_71 = arith.constant 0 : index
    %80 = vector.load %arg6[%c0_69, %c0_70, %c0_71] : memref<4x56x96xbf16, #tpu.memory_space<vmem>>, vector<1x56x96xbf16>
    %81 = vector.shape_cast %80 : vector<1x56x96xbf16> to vector<56x96xbf16>
    %cst_72 = arith.constant dense<0.000000e+00> : vector<12x96xf32>
    %82 = tpu.matmul %79, %81, %cst_72 {dimension_numbers = #tpu.dot_dimension_numbers<[1], [0], [0], [1], [0, 0, 1, 1], [], []>} : vector<12x56xbf16>, vector<56x96xbf16>, vector<12x96xf32> -> vector<12x96xf32>
    %c1_73 = arith.constant 1 : index
    %c0_74 = arith.constant 0 : index
    %c0_75 = arith.constant 0 : index
    %83 = vector.load %arg5[%c1_73, %c0_74, %c0_75] : memref<4x12x14xbf16, #tpu.memory_space<vmem>>, vector<1x12x14xbf16>
    %84 = vector.shape_cast %83 : vector<1x12x14xbf16> to vector<12x14xbf16>
    %cst_76 = arith.constant dense<0.000000e+00> : vector<12x56xf32>
    %85 = tpu.matmul %84, %75, %cst_76 {dimension_numbers = #tpu.dot_dimension_numbers<[1], [0], [0], [1], [0, 0, 1, 1], [], []>} : vector<12x14xbf16>, vector<14x56xbf16>, vector<12x56xf32> -> vector<12x56xf32>
    %86 = arith.truncf %85 : vector<12x56xf32> to vector<12x56xbf16>
    %c1_77 = arith.constant 1 : index
    %c0_78 = arith.constant 0 : index
    %c0_79 = arith.constant 0 : index
    %87 = vector.load %arg6[%c1_77, %c0_78, %c0_79] : memref<4x56x96xbf16, #tpu.memory_space<vmem>>, vector<1x56x96xbf16>
    %88 = vector.shape_cast %87 : vector<1x56x96xbf16> to vector<56x96xbf16>
    %cst_80 = arith.constant dense<0.000000e+00> : vector<12x96xf32>
    %89 = tpu.matmul %86, %88, %cst_80 {dimension_numbers = #tpu.dot_dimension_numbers<[1], [0], [0], [1], [0, 0, 1, 1], [], []>} : vector<12x56xbf16>, vector<56x96xbf16>, vector<12x96xf32> -> vector<12x96xf32>
    %90 = arith.addf %82, %89 : vector<12x96xf32>
    %c2_81 = arith.constant 2 : index
    %c0_82 = arith.constant 0 : index
    %c0_83 = arith.constant 0 : index
    %91 = vector.load %arg5[%c2_81, %c0_82, %c0_83] : memref<4x12x14xbf16, #tpu.memory_space<vmem>>, vector<1x12x14xbf16>
    %92 = vector.shape_cast %91 : vector<1x12x14xbf16> to vector<12x14xbf16>
    %cst_84 = arith.constant dense<0.000000e+00> : vector<12x56xf32>
    %93 = tpu.matmul %92, %75, %cst_84 {dimension_numbers = #tpu.dot_dimension_numbers<[1], [0], [0], [1], [0, 0, 1, 1], [], []>} : vector<12x14xbf16>, vector<14x56xbf16>, vector<12x56xf32> -> vector<12x56xf32>
    %94 = arith.truncf %93 : vector<12x56xf32> to vector<12x56xbf16>
    %c2_85 = arith.constant 2 : index
    %c0_86 = arith.constant 0 : index
    %c0_87 = arith.constant 0 : index
    %95 = vector.load %arg6[%c2_85, %c0_86, %c0_87] : memref<4x56x96xbf16, #tpu.memory_space<vmem>>, vector<1x56x96xbf16>
    %96 = vector.shape_cast %95 : vector<1x56x96xbf16> to vector<56x96xbf16>
    %cst_88 = arith.constant dense<0.000000e+00> : vector<12x96xf32>
    %97 = tpu.matmul %94, %96, %cst_88 {dimension_numbers = #tpu.dot_dimension_numbers<[1], [0], [0], [1], [0, 0, 1, 1], [], []>} : vector<12x56xbf16>, vector<56x96xbf16>, vector<12x96xf32> -> vector<12x96xf32>
    %98 = arith.addf %90, %97 : vector<12x96xf32>
    %c3_89 = arith.constant 3 : index
    %c0_90 = arith.constant 0 : index
    %c0_91 = arith.constant 0 : index
    %99 = vector.load %arg5[%c3_89, %c0_90, %c0_91] : memref<4x12x14xbf16, #tpu.memory_space<vmem>>, vector<1x12x14xbf16>
    %100 = vector.shape_cast %99 : vector<1x12x14xbf16> to vector<12x14xbf16>
    %cst_92 = arith.constant dense<0.000000e+00> : vector<12x56xf32>
    %101 = tpu.matmul %100, %75, %cst_92 {dimension_numbers = #tpu.dot_dimension_numbers<[1], [0], [0], [1], [0, 0, 1, 1], [], []>} : vector<12x14xbf16>, vector<14x56xbf16>, vector<12x56xf32> -> vector<12x56xf32>
    %102 = arith.truncf %101 : vector<12x56xf32> to vector<12x56xbf16>
    %c3_93 = arith.constant 3 : index
    %c0_94 = arith.constant 0 : index
    %c0_95 = arith.constant 0 : index
    %103 = vector.load %arg6[%c3_93, %c0_94, %c0_95] : memref<4x56x96xbf16, #tpu.memory_space<vmem>>, vector<1x56x96xbf16>
    %104 = vector.shape_cast %103 : vector<1x56x96xbf16> to vector<56x96xbf16>
    %cst_96 = arith.constant dense<0.000000e+00> : vector<12x96xf32>
    %105 = tpu.matmul %102, %104, %cst_96 {dimension_numbers = #tpu.dot_dimension_numbers<[1], [0], [0], [1], [0, 0, 1, 1], [], []>} : vector<12x56xbf16>, vector<56x96xbf16>, vector<12x96xf32> -> vector<12x96xf32>
    %106 = arith.addf %98, %105 : vector<12x96xf32>
    %cst_97 = arith.constant 0.000000e+00 : f32
    %107 = vector.broadcast %cst_97 : f32 to vector<12x96xf32>
    %108 = arith.cmpf oge, %106, %107 : vector<12x96xf32>
    %cst_98 = arith.constant 2.000000e-01 : f32
    %109 = vector.broadcast %cst_98 : f32 to vector<12x96xf32>
    %110 = arith.mulf %109, %106 : vector<12x96xf32>
    %111 = arith.select %108, %106, %110 : vector<12x96xi1>, vector<12x96xf32>
    %112 = arith.truncf %111 : vector<12x96xf32> to vector<12x96xbf16>
    %c0_99 = arith.constant 0 : index
    %c0_100 = arith.constant 0 : index
    %c0_101 = arith.constant 0 : index
    %113 = vector.load %arg7[%c0_99, %c0_100, %c0_101] : memref<4x6x12xbf16, #tpu.memory_space<vmem>>, vector<1x6x12xbf16>
    %114 = vector.shape_cast %113 : vector<1x6x12xbf16> to vector<6x12xbf16>
    %cst_102 = arith.constant dense<0.000000e+00> : vector<6x96xf32>
    %115 = tpu.matmul %114, %112, %cst_102 {dimension_numbers = #tpu.dot_dimension_numbers<[1], [0], [0], [1], [0, 0, 1, 1], [], []>} : vector<6x12xbf16>, vector<12x96xbf16>, vector<6x96xf32> -> vector<6x96xf32>
    %116 = arith.truncf %115 : vector<6x96xf32> to vector<6x96xbf16>
    %c0_103 = arith.constant 0 : index
    %c0_104 = arith.constant 0 : index
    %c0_105 = arith.constant 0 : index
    %117 = vector.load %arg8[%c0_103, %c0_104, %c0_105] : memref<4x96x48xbf16, #tpu.memory_space<vmem>>, vector<1x96x48xbf16>
    %118 = vector.shape_cast %117 : vector<1x96x48xbf16> to vector<96x48xbf16>
    %cst_106 = arith.constant dense<0.000000e+00> : vector<6x48xf32>
    %119 = tpu.matmul %116, %118, %cst_106 {dimension_numbers = #tpu.dot_dimension_numbers<[1], [0], [0], [1], [0, 0, 1, 1], [], []>} : vector<6x96xbf16>, vector<96x48xbf16>, vector<6x48xf32> -> vector<6x48xf32>
    %c1_107 = arith.constant 1 : index
    %c0_108 = arith.constant 0 : index
    %c0_109 = arith.constant 0 : index
    %120 = vector.load %arg7[%c1_107, %c0_108, %c0_109] : memref<4x6x12xbf16, #tpu.memory_space<vmem>>, vector<1x6x12xbf16>
    %121 = vector.shape_cast %120 : vector<1x6x12xbf16> to vector<6x12xbf16>
    %cst_110 = arith.constant dense<0.000000e+00> : vector<6x96xf32>
    %122 = tpu.matmul %121, %112, %cst_110 {dimension_numbers = #tpu.dot_dimension_numbers<[1], [0], [0], [1], [0, 0, 1, 1], [], []>} : vector<6x12xbf16>, vector<12x96xbf16>, vector<6x96xf32> -> vector<6x96xf32>
    %123 = arith.truncf %122 : vector<6x96xf32> to vector<6x96xbf16>
    %c1_111 = arith.constant 1 : index
    %c0_112 = arith.constant 0 : index
    %c0_113 = arith.constant 0 : index
    %124 = vector.load %arg8[%c1_111, %c0_112, %c0_113] : memref<4x96x48xbf16, #tpu.memory_space<vmem>>, vector<1x96x48xbf16>
    %125 = vector.shape_cast %124 : vector<1x96x48xbf16> to vector<96x48xbf16>
    %cst_114 = arith.constant dense<0.000000e+00> : vector<6x48xf32>
    %126 = tpu.matmul %123, %125, %cst_114 {dimension_numbers = #tpu.dot_dimension_numbers<[1], [0], [0], [1], [0, 0, 1, 1], [], []>} : vector<6x96xbf16>, vector<96x48xbf16>, vector<6x48xf32> -> vector<6x48xf32>
    %127 = arith.addf %119, %126 : vector<6x48xf32>
    %c2_115 = arith.constant 2 : index
    %c0_116 = arith.constant 0 : index
    %c0_117 = arith.constant 0 : index
    %128 = vector.load %arg7[%c2_115, %c0_116, %c0_117] : memref<4x6x12xbf16, #tpu.memory_space<vmem>>, vector<1x6x12xbf16>
    %129 = vector.shape_cast %128 : vector<1x6x12xbf16> to vector<6x12xbf16>
    %cst_118 = arith.constant dense<0.000000e+00> : vector<6x96xf32>
    %130 = tpu.matmul %129, %112, %cst_118 {dimension_numbers = #tpu.dot_dimension_numbers<[1], [0], [0], [1], [0, 0, 1, 1], [], []>} : vector<6x12xbf16>, vector<12x96xbf16>, vector<6x96xf32> -> vector<6x96xf32>
    %131 = arith.truncf %130 : vector<6x96xf32> to vector<6x96xbf16>
    %c2_119 = arith.constant 2 : index
    %c0_120 = arith.constant 0 : index
    %c0_121 = arith.constant 0 : index
    %132 = vector.load %arg8[%c2_119, %c0_120, %c0_121] : memref<4x96x48xbf16, #tpu.memory_space<vmem>>, vector<1x96x48xbf16>
    %133 = vector.shape_cast %132 : vector<1x96x48xbf16> to vector<96x48xbf16>
    %cst_122 = arith.constant dense<0.000000e+00> : vector<6x48xf32>
    %134 = tpu.matmul %131, %133, %cst_122 {dimension_numbers = #tpu.dot_dimension_numbers<[1], [0], [0], [1], [0, 0, 1, 1], [], []>} : vector<6x96xbf16>, vector<96x48xbf16>, vector<6x48xf32> -> vector<6x48xf32>
    %135 = arith.addf %127, %134 : vector<6x48xf32>
    %c3_123 = arith.constant 3 : index
    %c0_124 = arith.constant 0 : index
    %c0_125 = arith.constant 0 : index
    %136 = vector.load %arg7[%c3_123, %c0_124, %c0_125] : memref<4x6x12xbf16, #tpu.memory_space<vmem>>, vector<1x6x12xbf16>
    %137 = vector.shape_cast %136 : vector<1x6x12xbf16> to vector<6x12xbf16>
    %cst_126 = arith.constant dense<0.000000e+00> : vector<6x96xf32>
    %138 = tpu.matmul %137, %112, %cst_126 {dimension_numbers = #tpu.dot_dimension_numbers<[1], [0], [0], [1], [0, 0, 1, 1], [], []>} : vector<6x12xbf16>, vector<12x96xbf16>, vector<6x96xf32> -> vector<6x96xf32>
    %139 = arith.truncf %138 : vector<6x96xf32> to vector<6x96xbf16>
    %c3_127 = arith.constant 3 : index
    %c0_128 = arith.constant 0 : index
    %c0_129 = arith.constant 0 : index
    %140 = vector.load %arg8[%c3_127, %c0_128, %c0_129] : memref<4x96x48xbf16, #tpu.memory_space<vmem>>, vector<1x96x48xbf16>
    %141 = vector.shape_cast %140 : vector<1x96x48xbf16> to vector<96x48xbf16>
    %cst_130 = arith.constant dense<0.000000e+00> : vector<6x48xf32>
    %142 = tpu.matmul %139, %141, %cst_130 {dimension_numbers = #tpu.dot_dimension_numbers<[1], [0], [0], [1], [0, 0, 1, 1], [], []>} : vector<6x96xbf16>, vector<96x48xbf16>, vector<6x48xf32> -> vector<6x48xf32>
    %143 = arith.addf %135, %142 : vector<6x48xf32>
    %c0_131 = arith.constant 0 : index
    %c0_132 = arith.constant 0 : index
    %144 = vector.load %arg9[%c0_131, %c0_132] : memref<48x48xf32, #tpu.memory_space<vmem>>, vector<48x48xf32>
    %cst_133 = arith.constant dense<0.000000e+00> : vector<48xf32>
    %145 = vector.multi_reduction <add>, %143, %cst_133 [0] : vector<6x48xf32> to vector<48xf32>
    %146 = vector.shape_cast %145 : vector<48xf32> to vector<1x48xf32>
    %cst_134 = arith.constant dense<0.000000e+00> : vector<1x48xf32>
    %147 = tpu.matmul %146, %144, %cst_134 {dimension_numbers = #tpu.dot_dimension_numbers<[1], [0], [0], [1], [0, 0, 1, 1], [], []>} : vector<1x48xf32>, vector<48x48xf32>, vector<1x48xf32> -> vector<1x48xf32>
    %148 = vector.broadcast %147 : vector<1x48xf32> to vector<6x48xf32>
    %149 = arith.subf %143, %148 : vector<6x48xf32>
    %150 = arith.mulf %149, %149 : vector<6x48xf32>
    %cst_135 = arith.constant dense<0.000000e+00> : vector<48xf32>
    %151 = vector.multi_reduction <add>, %150, %cst_135 [0] : vector<6x48xf32> to vector<48xf32>
    %152 = vector.shape_cast %151 : vector<48xf32> to vector<1x48xf32>
    %cst_136 = arith.constant dense<0.000000e+00> : vector<1x48xf32>
    %153 = tpu.matmul %152, %144, %cst_136 {dimension_numbers = #tpu.dot_dimension_numbers<[1], [0], [0], [1], [0, 0, 1, 1], [], []>} : vector<1x48xf32>, vector<48x48xf32>, vector<1x48xf32> -> vector<1x48xf32>
    %cst_137 = arith.constant 9.99999974E-6 : f32
    %154 = vector.broadcast %cst_137 : f32 to vector<1x48xf32>
    %155 = arith.addf %153, %154 : vector<1x48xf32>
    %156 = math.rsqrt %155 : vector<1x48xf32>
    %157 = vector.broadcast %156 : vector<1x48xf32> to vector<6x48xf32>
    %158 = arith.mulf %149, %157 : vector<6x48xf32>
    %cst_138 = arith.constant 0.000000e+00 : f32
    %159 = vector.broadcast %cst_138 : f32 to vector<6x48xf32>
    %160 = arith.cmpf oge, %158, %159 : vector<6x48xf32>
    %cst_139 = arith.constant 2.000000e-01 : f32
    %161 = vector.broadcast %cst_139 : f32 to vector<6x48xf32>
    %162 = arith.mulf %161, %158 : vector<6x48xf32>
    %163 = arith.select %160, %158, %162 : vector<6x48xi1>, vector<6x48xf32>
    %164 = arith.truncf %163 : vector<6x48xf32> to vector<6x48xbf16>
    %c0_140 = arith.constant 0 : index
    %c0_141 = arith.constant 0 : index
    %c0_142 = arith.constant 0 : index
    %165 = vector.load %arg10[%c0_140, %c0_141, %c0_142] : memref<4x4x6xbf16, #tpu.memory_space<vmem>>, vector<1x4x6xbf16>
    %166 = vector.shape_cast %165 : vector<1x4x6xbf16> to vector<4x6xbf16>
    %cst_143 = arith.constant dense<0.000000e+00> : vector<4x48xf32>
    %167 = tpu.matmul %166, %164, %cst_143 {dimension_numbers = #tpu.dot_dimension_numbers<[1], [0], [0], [1], [0, 0, 1, 1], [], []>} : vector<4x6xbf16>, vector<6x48xbf16>, vector<4x48xf32> -> vector<4x48xf32>
    %168 = arith.truncf %167 : vector<4x48xf32> to vector<4x48xbf16>
    %c0_144 = arith.constant 0 : index
    %c0_145 = arith.constant 0 : index
    %c0_146 = arith.constant 0 : index
    %169 = vector.load %arg11[%c0_144, %c0_145, %c0_146] : memref<4x48x64xbf16, #tpu.memory_space<vmem>>, vector<1x48x64xbf16>
    %170 = vector.shape_cast %169 : vector<1x48x64xbf16> to vector<48x64xbf16>
    %cst_147 = arith.constant dense<0.000000e+00> : vector<4x64xf32>
    %171 = tpu.matmul %168, %170, %cst_147 {dimension_numbers = #tpu.dot_dimension_numbers<[1], [0], [0], [1], [0, 0, 1, 1], [], []>} : vector<4x48xbf16>, vector<48x64xbf16>, vector<4x64xf32> -> vector<4x64xf32>
    %c1_148 = arith.constant 1 : index
    %c0_149 = arith.constant 0 : index
    %c0_150 = arith.constant 0 : index
    %172 = vector.load %arg10[%c1_148, %c0_149, %c0_150] : memref<4x4x6xbf16, #tpu.memory_space<vmem>>, vector<1x4x6xbf16>
    %173 = vector.shape_cast %172 : vector<1x4x6xbf16> to vector<4x6xbf16>
    %cst_151 = arith.constant dense<0.000000e+00> : vector<4x48xf32>
    %174 = tpu.matmul %173, %164, %cst_151 {dimension_numbers = #tpu.dot_dimension_numbers<[1], [0], [0], [1], [0, 0, 1, 1], [], []>} : vector<4x6xbf16>, vector<6x48xbf16>, vector<4x48xf32> -> vector<4x48xf32>
    %175 = arith.truncf %174 : vector<4x48xf32> to vector<4x48xbf16>
    %c1_152 = arith.constant 1 : index
    %c0_153 = arith.constant 0 : index
    %c0_154 = arith.constant 0 : index
    %176 = vector.load %arg11[%c1_152, %c0_153, %c0_154] : memref<4x48x64xbf16, #tpu.memory_space<vmem>>, vector<1x48x64xbf16>
    %177 = vector.shape_cast %176 : vector<1x48x64xbf16> to vector<48x64xbf16>
    %cst_155 = arith.constant dense<0.000000e+00> : vector<4x64xf32>
    %178 = tpu.matmul %175, %177, %cst_155 {dimension_numbers = #tpu.dot_dimension_numbers<[1], [0], [0], [1], [0, 0, 1, 1], [], []>} : vector<4x48xbf16>, vector<48x64xbf16>, vector<4x64xf32> -> vector<4x64xf32>
    %179 = arith.addf %171, %178 : vector<4x64xf32>
    %c2_156 = arith.constant 2 : index
    %c0_157 = arith.constant 0 : index
    %c0_158 = arith.constant 0 : index
    %180 = vector.load %arg10[%c2_156, %c0_157, %c0_158] : memref<4x4x6xbf16, #tpu.memory_space<vmem>>, vector<1x4x6xbf16>
    %181 = vector.shape_cast %180 : vector<1x4x6xbf16> to vector<4x6xbf16>
    %cst_159 = arith.constant dense<0.000000e+00> : vector<4x48xf32>
    %182 = tpu.matmul %181, %164, %cst_159 {dimension_numbers = #tpu.dot_dimension_numbers<[1], [0], [0], [1], [0, 0, 1, 1], [], []>} : vector<4x6xbf16>, vector<6x48xbf16>, vector<4x48xf32> -> vector<4x48xf32>
    %183 = arith.truncf %182 : vector<4x48xf32> to vector<4x48xbf16>
    %c2_160 = arith.constant 2 : index
    %c0_161 = arith.constant 0 : index
    %c0_162 = arith.constant 0 : index
    %184 = vector.load %arg11[%c2_160, %c0_161, %c0_162] : memref<4x48x64xbf16, #tpu.memory_space<vmem>>, vector<1x48x64xbf16>
    %185 = vector.shape_cast %184 : vector<1x48x64xbf16> to vector<48x64xbf16>
    %cst_163 = arith.constant dense<0.000000e+00> : vector<4x64xf32>
    %186 = tpu.matmul %183, %185, %cst_163 {dimension_numbers = #tpu.dot_dimension_numbers<[1], [0], [0], [1], [0, 0, 1, 1], [], []>} : vector<4x48xbf16>, vector<48x64xbf16>, vector<4x64xf32> -> vector<4x64xf32>
    %187 = arith.addf %179, %186 : vector<4x64xf32>
    %c3_164 = arith.constant 3 : index
    %c0_165 = arith.constant 0 : index
    %c0_166 = arith.constant 0 : index
    %188 = vector.load %arg10[%c3_164, %c0_165, %c0_166] : memref<4x4x6xbf16, #tpu.memory_space<vmem>>, vector<1x4x6xbf16>
    %189 = vector.shape_cast %188 : vector<1x4x6xbf16> to vector<4x6xbf16>
    %cst_167 = arith.constant dense<0.000000e+00> : vector<4x48xf32>
    %190 = tpu.matmul %189, %164, %cst_167 {dimension_numbers = #tpu.dot_dimension_numbers<[1], [0], [0], [1], [0, 0, 1, 1], [], []>} : vector<4x6xbf16>, vector<6x48xbf16>, vector<4x48xf32> -> vector<4x48xf32>
    %191 = arith.truncf %190 : vector<4x48xf32> to vector<4x48xbf16>
    %c3_168 = arith.constant 3 : index
    %c0_169 = arith.constant 0 : index
    %c0_170 = arith.constant 0 : index
    %192 = vector.load %arg11[%c3_168, %c0_169, %c0_170] : memref<4x48x64xbf16, #tpu.memory_space<vmem>>, vector<1x48x64xbf16>
    %193 = vector.shape_cast %192 : vector<1x48x64xbf16> to vector<48x64xbf16>
    %cst_171 = arith.constant dense<0.000000e+00> : vector<4x64xf32>
    %194 = tpu.matmul %191, %193, %cst_171 {dimension_numbers = #tpu.dot_dimension_numbers<[1], [0], [0], [1], [0, 0, 1, 1], [], []>} : vector<4x48xbf16>, vector<48x64xbf16>, vector<4x64xf32> -> vector<4x64xf32>
    %195 = arith.addf %187, %194 : vector<4x64xf32>
    %cst_172 = arith.constant 0.000000e+00 : f32
    %196 = vector.broadcast %cst_172 : f32 to vector<4x64xf32>
    %197 = arith.cmpf oge, %195, %196 : vector<4x64xf32>
    %cst_173 = arith.constant 2.000000e-01 : f32
    %198 = vector.broadcast %cst_173 : f32 to vector<4x64xf32>
    %199 = arith.mulf %198, %195 : vector<4x64xf32>
    %200 = arith.select %197, %195, %199 : vector<4x64xi1>, vector<4x64xf32>
    %201 = arith.truncf %200 : vector<4x64xf32> to vector<4x64xbf16>
    %c0_174 = arith.constant 0 : index
    %c0_175 = arith.constant 0 : index
    %c0_176 = arith.constant 0 : index
    %202 = vector.load %arg12[%c0_174, %c0_175, %c0_176] : memref<4x2x4xbf16, #tpu.memory_space<vmem>>, vector<1x2x4xbf16>
    %203 = vector.shape_cast %202 : vector<1x2x4xbf16> to vector<2x4xbf16>
    %cst_177 = arith.constant dense<0.000000e+00> : vector<2x64xf32>
    %204 = tpu.matmul %203, %201, %cst_177 {dimension_numbers = #tpu.dot_dimension_numbers<[1], [0], [0], [1], [0, 0, 1, 1], [], []>} : vector<2x4xbf16>, vector<4x64xbf16>, vector<2x64xf32> -> vector<2x64xf32>
    %205 = arith.truncf %204 : vector<2x64xf32> to vector<2x64xbf16>
    %c0_178 = arith.constant 0 : index
    %c0_179 = arith.constant 0 : index
    %c0_180 = arith.constant 0 : index
    %206 = vector.load %arg13[%c0_178, %c0_179, %c0_180] : memref<4x64x32xbf16, #tpu.memory_space<vmem>>, vector<1x64x32xbf16>
    %207 = vector.shape_cast %206 : vector<1x64x32xbf16> to vector<64x32xbf16>
    %cst_181 = arith.constant dense<0.000000e+00> : vector<2x32xf32>
    %208 = tpu.matmul %205, %207, %cst_181 {dimension_numbers = #tpu.dot_dimension_numbers<[1], [0], [0], [1], [0, 0, 1, 1], [], []>} : vector<2x64xbf16>, vector<64x32xbf16>, vector<2x32xf32> -> vector<2x32xf32>
    %c1_182 = arith.constant 1 : index
    %c0_183 = arith.constant 0 : index
    %c0_184 = arith.constant 0 : index
    %209 = vector.load %arg12[%c1_182, %c0_183, %c0_184] : memref<4x2x4xbf16, #tpu.memory_space<vmem>>, vector<1x2x4xbf16>
    %210 = vector.shape_cast %209 : vector<1x2x4xbf16> to vector<2x4xbf16>
    %cst_185 = arith.constant dense<0.000000e+00> : vector<2x64xf32>
    %211 = tpu.matmul %210, %201, %cst_185 {dimension_numbers = #tpu.dot_dimension_numbers<[1], [0], [0], [1], [0, 0, 1, 1], [], []>} : vector<2x4xbf16>, vector<4x64xbf16>, vector<2x64xf32> -> vector<2x64xf32>
    %212 = arith.truncf %211 : vector<2x64xf32> to vector<2x64xbf16>
    %c1_186 = arith.constant 1 : index
    %c0_187 = arith.constant 0 : index
    %c0_188 = arith.constant 0 : index
    %213 = vector.load %arg13[%c1_186, %c0_187, %c0_188] : memref<4x64x32xbf16, #tpu.memory_space<vmem>>, vector<1x64x32xbf16>
    %214 = vector.shape_cast %213 : vector<1x64x32xbf16> to vector<64x32xbf16>
    %cst_189 = arith.constant dense<0.000000e+00> : vector<2x32xf32>
    %215 = tpu.matmul %212, %214, %cst_189 {dimension_numbers = #tpu.dot_dimension_numbers<[1], [0], [0], [1], [0, 0, 1, 1], [], []>} : vector<2x64xbf16>, vector<64x32xbf16>, vector<2x32xf32> -> vector<2x32xf32>
    %216 = arith.addf %208, %215 : vector<2x32xf32>
    %c2_190 = arith.constant 2 : index
    %c0_191 = arith.constant 0 : index
    %c0_192 = arith.constant 0 : index
    %217 = vector.load %arg12[%c2_190, %c0_191, %c0_192] : memref<4x2x4xbf16, #tpu.memory_space<vmem>>, vector<1x2x4xbf16>
    %218 = vector.shape_cast %217 : vector<1x2x4xbf16> to vector<2x4xbf16>
    %cst_193 = arith.constant dense<0.000000e+00> : vector<2x64xf32>
    %219 = tpu.matmul %218, %201, %cst_193 {dimension_numbers = #tpu.dot_dimension_numbers<[1], [0], [0], [1], [0, 0, 1, 1], [], []>} : vector<2x4xbf16>, vector<4x64xbf16>, vector<2x64xf32> -> vector<2x64xf32>
    %220 = arith.truncf %219 : vector<2x64xf32> to vector<2x64xbf16>
    %c2_194 = arith.constant 2 : index
    %c0_195 = arith.constant 0 : index
    %c0_196 = arith.constant 0 : index
    %221 = vector.load %arg13[%c2_194, %c0_195, %c0_196] : memref<4x64x32xbf16, #tpu.memory_space<vmem>>, vector<1x64x32xbf16>
    %222 = vector.shape_cast %221 : vector<1x64x32xbf16> to vector<64x32xbf16>
    %cst_197 = arith.constant dense<0.000000e+00> : vector<2x32xf32>
    %223 = tpu.matmul %220, %222, %cst_197 {dimension_numbers = #tpu.dot_dimension_numbers<[1], [0], [0], [1], [0, 0, 1, 1], [], []>} : vector<2x64xbf16>, vector<64x32xbf16>, vector<2x32xf32> -> vector<2x32xf32>
    %224 = arith.addf %216, %223 : vector<2x32xf32>
    %c3_198 = arith.constant 3 : index
    %c0_199 = arith.constant 0 : index
    %c0_200 = arith.constant 0 : index
    %225 = vector.load %arg12[%c3_198, %c0_199, %c0_200] : memref<4x2x4xbf16, #tpu.memory_space<vmem>>, vector<1x2x4xbf16>
    %226 = vector.shape_cast %225 : vector<1x2x4xbf16> to vector<2x4xbf16>
    %cst_201 = arith.constant dense<0.000000e+00> : vector<2x64xf32>
    %227 = tpu.matmul %226, %201, %cst_201 {dimension_numbers = #tpu.dot_dimension_numbers<[1], [0], [0], [1], [0, 0, 1, 1], [], []>} : vector<2x4xbf16>, vector<4x64xbf16>, vector<2x64xf32> -> vector<2x64xf32>
    %228 = arith.truncf %227 : vector<2x64xf32> to vector<2x64xbf16>
    %c3_202 = arith.constant 3 : index
    %c0_203 = arith.constant 0 : index
    %c0_204 = arith.constant 0 : index
    %229 = vector.load %arg13[%c3_202, %c0_203, %c0_204] : memref<4x64x32xbf16, #tpu.memory_space<vmem>>, vector<1x64x32xbf16>
    %230 = vector.shape_cast %229 : vector<1x64x32xbf16> to vector<64x32xbf16>
    %cst_205 = arith.constant dense<0.000000e+00> : vector<2x32xf32>
    %231 = tpu.matmul %228, %230, %cst_205 {dimension_numbers = #tpu.dot_dimension_numbers<[1], [0], [0], [1], [0, 0, 1, 1], [], []>} : vector<2x64xbf16>, vector<64x32xbf16>, vector<2x32xf32> -> vector<2x32xf32>
    %232 = arith.addf %224, %231 : vector<2x32xf32>
    %c0_206 = arith.constant 0 : index
    %c0_207 = arith.constant 0 : index
    %233 = vector.load %arg14[%c0_206, %c0_207] : memref<32x32xf32, #tpu.memory_space<vmem>>, vector<32x32xf32>
    %cst_208 = arith.constant dense<0.000000e+00> : vector<32xf32>
    %234 = vector.multi_reduction <add>, %232, %cst_208 [0] : vector<2x32xf32> to vector<32xf32>
    %235 = vector.shape_cast %234 : vector<32xf32> to vector<1x32xf32>
    %cst_209 = arith.constant dense<0.000000e+00> : vector<1x32xf32>
    %236 = tpu.matmul %235, %233, %cst_209 {dimension_numbers = #tpu.dot_dimension_numbers<[1], [0], [0], [1], [0, 0, 1, 1], [], []>} : vector<1x32xf32>, vector<32x32xf32>, vector<1x32xf32> -> vector<1x32xf32>
    %237 = vector.broadcast %236 : vector<1x32xf32> to vector<2x32xf32>
    %238 = arith.subf %232, %237 : vector<2x32xf32>
    %239 = arith.mulf %238, %238 : vector<2x32xf32>
    %cst_210 = arith.constant dense<0.000000e+00> : vector<32xf32>
    %240 = vector.multi_reduction <add>, %239, %cst_210 [0] : vector<2x32xf32> to vector<32xf32>
    %241 = vector.shape_cast %240 : vector<32xf32> to vector<1x32xf32>
    %cst_211 = arith.constant dense<0.000000e+00> : vector<1x32xf32>
    %242 = tpu.matmul %241, %233, %cst_211 {dimension_numbers = #tpu.dot_dimension_numbers<[1], [0], [0], [1], [0, 0, 1, 1], [], []>} : vector<1x32xf32>, vector<32x32xf32>, vector<1x32xf32> -> vector<1x32xf32>
    %cst_212 = arith.constant 9.99999974E-6 : f32
    %243 = vector.broadcast %cst_212 : f32 to vector<1x32xf32>
    %244 = arith.addf %242, %243 : vector<1x32xf32>
    %245 = math.rsqrt %244 : vector<1x32xf32>
    %246 = vector.broadcast %245 : vector<1x32xf32> to vector<2x32xf32>
    %247 = arith.mulf %238, %246 : vector<2x32xf32>
    %cst_213 = arith.constant 0.000000e+00 : f32
    %248 = vector.broadcast %cst_213 : f32 to vector<2x32xf32>
    %249 = arith.cmpf oge, %247, %248 : vector<2x32xf32>
    %cst_214 = arith.constant 2.000000e-01 : f32
    %250 = vector.broadcast %cst_214 : f32 to vector<2x32xf32>
    %251 = arith.mulf %250, %247 : vector<2x32xf32>
    %252 = arith.select %249, %247, %251 : vector<2x32xi1>, vector<2x32xf32>
    %c0_215 = arith.constant 0 : index
    %c0_216 = arith.constant 0 : index
    %253 = vector.load %arg15[%c0_215, %c0_216] : memref<32x1xf32, #tpu.memory_space<vmem>>, vector<32x1xf32>
    %c0_217 = arith.constant 0 : index
    %c0_218 = arith.constant 0 : index
    %254 = vector.load %arg16[%c0_217, %c0_218] : memref<1x1xf32, #tpu.memory_space<vmem>>, vector<1x1xf32>
    %cst_219 = arith.constant dense<0.000000e+00> : vector<2x1xf32>
    %255 = tpu.matmul %252, %253, %cst_219 {dimension_numbers = #tpu.dot_dimension_numbers<[1], [0], [0], [1], [0, 0, 1, 1], [], []>} : vector<2x32xf32>, vector<32x1xf32>, vector<2x1xf32> -> vector<2x1xf32>
    %256 = vector.broadcast %254 : vector<1x1xf32> to vector<2x1xf32>
    %257 = arith.addf %255, %256 : vector<2x1xf32>
    %cst_220 = arith.constant 0.000000e+00 : f32
    %258 = vector.broadcast %cst_220 : f32 to vector<2x1xf32>
    %259 = arith.cmpf oge, %257, %258 : vector<2x1xf32>
    %cst_221 = arith.constant 0.000000e+00 : f32
    %260 = vector.broadcast %cst_221 : f32 to vector<2x1xf32>
    %261 = arith.subf %260, %257 : vector<2x1xf32>
    %262 = arith.select %259, %261, %257 : vector<2x1xi1>, vector<2x1xf32>
    %263 = math.exp %262 : vector<2x1xf32>
    %cst_222 = arith.constant 0.000000e+00 : f32
    %264 = vector.broadcast %cst_222 : f32 to vector<2x1xf32>
    %265 = arith.cmpf oge, %257, %264 : vector<2x1xf32>
    %cst_223 = arith.constant 1.000000e+00 : f32
    %266 = vector.broadcast %cst_223 : f32 to vector<2x1xf32>
    %267 = arith.addf %266, %263 : vector<2x1xf32>
    %cst_224 = arith.constant 1.000000e+00 : f32
    %268 = vector.broadcast %cst_224 : f32 to vector<2x1xf32>
    %269 = arith.divf %268, %267 : vector<2x1xf32>
    %cst_225 = arith.constant 1.000000e+00 : f32
    %270 = vector.broadcast %cst_225 : f32 to vector<2x1xf32>
    %271 = arith.addf %270, %263 : vector<2x1xf32>
    %272 = arith.divf %263, %271 : vector<2x1xf32>
    %273 = arith.select %265, %269, %272 : vector<2x1xi1>, vector<2x1xf32>
    %c0_226 = arith.constant 0 : index
    %c0_227 = arith.constant 0 : index
    %274 = vector.load %arg17[%c0_226, %c0_227] : memref<2x1xf32, #tpu.memory_space<vmem>>, vector<2x1xf32>
    tpu.vector_store %arg17[%c0_226, %c0_227], %273 {strides = array<i32>} : memref<2x1xf32, #tpu.memory_space<vmem>>, vector<2x1xf32>,
    return
  }
}

</mosaic_0001>

<bundles_post_ra>
// kernel: forward.1
= control target key start
LH: loop header
LB: loop body
LE: loop exit
PB: predicated region body
PF: predicated region fallthrough
CT: control target
= control target key end

     0   :  { %vm79_vm0 = vcmask 261120   ;;  %vm190_vm1 = vcmask 523264   ;;  %vm623_vm2 = vcmask 1043456   ;;  %vm498_vm5 = vcmask 1046528   ;;  %s3927_s0 = inlined_call_operand.vmem [shape: f32[32,64], index: 0, kind: input, shape index: {}]   ;;  %s3928_s1 = inlined_call_operand.vmem [shape: bf16[4,30,32], index: 1, kind: input, shape index: {}]   ;;  %s3929_s2 = inlined_call_operand.vmem [shape: bf16[4,64,120], index: 2, kind: input, shape index: {}]   ;;  %s3930_s4 = inlined_call_operand.vmem [shape: bf16[4,120,56], index: 4, kind: input, shape index: {}]   ;;  %s3931_s3 = inlined_call_operand.vmem [shape: bf16[4,14,30], index: 3, kind: input, shape index: {}]   ;;  %s3932_s6 = inlined_call_operand.vmem [shape: bf16[4,56,96], index: 6, kind: input, shape index: {}]   ;;  %s3933_s5 = inlined_call_operand.vmem [shape: bf16[4,12,14], index: 5, kind: input, shape index: {}]   ;;  %s3934_s8 = inlined_call_operand.vmem [shape: bf16[4,96,48], index: 8, kind: input, shape index: {}]   ;;  %s3935_s7 = inlined_call_operand.vmem [shape: bf16[4,6,12], index: 7, kind: input, shape index: {}]   ;;  %s3936_s9 = inlined_call_operand.vmem [shape: f32[48,48], index: 9, kind: input, shape index: {}]   ;;  %s3937_s11 = inlined_call_operand.vmem [shape: bf16[4,48,64], index: 11, kind: input, shape index: {}]   ;;  %s3938_s10 = inlined_call_operand.vmem [shape: bf16[4,4,6], index: 10, kind: input, shape index: {}]   ;;  %s3939_s13 = inlined_call_operand.vmem [shape: bf16[4,64,32], index: 13, kind: input, shape index: {}]   ;;  %s3940_s12 = inlined_call_operand.vmem [shape: bf16[4,2,4], index: 12, kind: input, shape index: {}]   ;;  %s3941_s14 = inlined_call_operand.vmem [shape: f32[32,32], index: 14, kind: input, shape index: {}]   ;;  %s3942_s15 = inlined_call_operand.vmem [shape: f32[32,1], index: 15, kind: input, shape index: {}]   ;;  %s3943_s16 = inlined_call_operand.<no memory space> [shape: f32[1,1], index: 16, kind: input, shape index: {}]   ;;  %s3944_s17 = inlined_call_operand.vmem [shape: f32[2,1], index: 17, kind: output, shape index: {}]  }
   0x1   :  { %3947 = sst [smem:[#allocation3_spill]] %s3927_s0  ;;  %v3112_v14 = vld [vmem:[%s3929_s2 + $0x38] sm:$0xff]  ;;  %v3111_v20 = vld [vmem:[%s3929_s2 + $0x30] sm:$0xff]  ;;  %v3110_v22 = vld [vmem:[%s3929_s2 + $0x28] sm:$0xff]  ;;  %vm494_vm8 = vcmask 244736   ;;  %vm619_vm9 = vcmask 982016  }
   0x2   :  { %3948 = sst [smem:[#allocation4_spill]] %s3928_s1  ;;  %v3106_v15 = vld [vmem:[%s3929_s2 + $0x18] sm:$0xff]  ;;  %201 = vmatpush.bf16.msra.mxu2 %v3112_v14  ;;  %v3105_v21 = vld [vmem:[%s3929_s2 + $0x10] sm:$0xff]  ;;  %v3104_v23 = vld [vmem:[%s3929_s2 + $0x8] sm:$0xff]  ;;  %vm938_vm12 = vcmask 113664   ;;  %vm1022_vm13 = vcmask 457728  }
   0x3   :  { %s3949_s26 = sld [smem:[#allocation3_spill]]  ;;  %250 = vmatpush.bf16.msra.mxu3 %v3106_v15  ;;  %v3109_v24 = vld [vmem:[%s3929_s2 + $0x20] sm:$0xff]  ;;  %v3118_v26 = vld [vmem:[%s3929_s2 + $0x58] sm:$0xff]  ;;  %v3117_v27 = vld [vmem:[%s3929_s2 + $0x50] sm:$0xff] }
   0x4   :  { %s3950_s20 = sld [smem:[#allocation4_spill]]  ;;  %v3103_v25 = vld [vmem:[%s3929_s2] sm:$0xff]  ;;  %v3116_v30 = vld [vmem:[%s3929_s2 + $0x48] sm:$0xff]  ;;  %v3124_v52 = vld [vmem:[%s3929_s2 + $0x78] sm:$0xff] }
   0x5   :  { %v3115_v31 = vld [vmem:[%s3929_s2 + $0x40] sm:$0xff]  ;;  %v3123_v53 = vld [vmem:[%s3929_s2 + $0x70] sm:$0xff]  ;;  %v3122_v55 = vld [vmem:[%s3929_s2 + $0x68] sm:$0xff] }
   0x6   :  { %202 = vmatpush.bf16.msra.mxu2 %v3111_v20  ;;  %v3121_v56 = vld [vmem:[%s3929_s2 + $0x60] sm:$0xff]  ;;  %v3136_v14 = vld [vmem:[%s3930_s4 + $0x4c] sm:$0xff] }
   0x7   :  { %251 = vmatpush.bf16.msra.mxu3 %v3105_v21 }
   0x9   :  { %v61_v0 = vld [vmem:[%s3949_s26 + $0x10] sm:$0xff]  ;;  %v62_v1 = vld [vmem:[%s3949_s26 + $0x18] sm:$0xff]  ;;  %v59_v2 = vld [vmem:[%s3949_s26] sm:$0xff] }
   0xa   :  { %v64_v3 = vpack.c.bf16 %v62_v1, %v61_v0  ;;  %v60_v4 = vld [vmem:[%s3949_s26 + $0x8] sm:$0xff]  ;;  %v3101_v6 = vld [vmem:[%s3950_s20] sm:$0xff]  ;;  %v3107_v7 = vld [vmem:[%s3950_s20 + $0x10] sm:$0xff]  ;;  %203 = vmatpush.bf16.msra.mxu2 %v3110_v22 }
   0xb   :  { %v63_v5 = vpack.c.bf16 %v60_v4, %v59_v2  ;;  %v2349_v8 = vld [vmem:[%s3950_s20 + $0x8] sm:$0xf]  ;;  %v3102_v9 = vld [vmem:[%s3950_s20 + $0x8] sm:$0x70]  ;;  %v2363_v10 = vld [vmem:[%s3950_s20 + $0x18] sm:$0xf]  ;;  %252 = vmatpush.bf16.msra.mxu3 %v3104_v23 }
   0xc   :  { %92 = vmatpush.bf16.msra.mxu0 %v64_v3  ;;  %142 = vmatpush.bf16.msra.mxu1 %v64_v3  ;;  %v3108_v11 = vld [vmem:[%s3950_s20 + $0x18] sm:$0x70]  ;;  %v2350_v12 = vor.u32 %v3102_v9, %v2349_v8  ;;  %v3113_v16 = vld [vmem:[%s3950_s20 + $0x20] sm:$0xff]  ;;  %v2421_v17 = vld [vmem:[%s3950_s20 + $0x28] sm:$0xf] }
   0xd   :  { %v2364_v13 = vor.u32 %v3108_v11, %v2363_v10  ;;  %v3114_v18 = vld [vmem:[%s3950_s20 + $0x28] sm:$0x70]  ;;  %v3119_v43 = vld [vmem:[%s3950_s20 + $0x30] sm:$0xff]  ;;  %v2461_v47 = vld [vmem:[%s3950_s20 + $0x38] sm:$0xf] }
   0xe   :  { %v2422_v19 = vor.u32 %v3114_v18, %v2421_v17  ;;  %204 = vmatpush.bf16.msra.mxu2 %v3109_v24  ;;  %v3120_v48 = vld [vmem:[%s3950_s20 + $0x38] sm:$0x70]  ;;  %v3140_v8 = vld [vmem:[%s3930_s4 + $0x6c] sm:$0xff]  ;;  %v3139_v9 = vld [vmem:[%s3930_s4 + $0x64] sm:$0xff] }
   0xf   :  { %253 = vmatpush.bf16.msra.mxu3 %v3103_v25  ;;  %v2462_v49 = vor.u32 %v3120_v48, %v2461_v47  ;;  %v3138_v11 = vld [vmem:[%s3930_s4 + $0x5c] sm:$0xff] }
  0x10   :  { %93 = vmatpush.bf16.msra.mxu0 %v63_v5  ;;  %143 = vmatpush.bf16.msra.mxu1 %v63_v5  ;;  %v3134_v17 = vld [vmem:[%s3930_s4 + $0x3c] sm:$0xff] }
  0x12   :  { %396 = vmatpush.bf16.msrb.mxu2 %v64_v3 }
  0x13   :  { %2351 = vmatmul.msk.bf16.vlgmr.msra.gmra.mxu0 %vm79_vm0, %v3101_v6  ;;  %2365 = vmatmul.msk.bf16.vlgmr.msra.gmra.mxu1 %vm79_vm0, %v3107_v7 }
  0x14   :  { %292 = vmatpush.bf16.msrb.mxu0 %v64_v3  ;;  %350 = vmatpush.bf16.msrb.mxu1 %v3118_v26  ;;  %v2517_v3 = vld [vmem:[%s3930_s4 + $0x74] sm:$0xf] }
  0x15   :  { %454 = vmatpush.bf16.msrb.mxu3 %v3124_v52  ;;  %v603_v4 = vunpack.c.l.b16 %v2517_v3  ;;  %v3141_v3 = vld [vmem:[%s3931_s3 + $0x10] sm:$0x70] }
  0x16   :  { %397 = vmatpush.bf16.msrb.mxu2 %v63_v5 }
  0x18   :  { %293 = vmatpush.bf16.msrb.mxu0 %v63_v5  ;;  %351 = vmatpush.bf16.msrb.mxu1 %v3117_v27  ;;  %v611_v5 = vpack.c.b16 %v603_v4, %v603_v4 }
  0x19   :  { %455 = vmatpush.bf16.msrb.mxu3 %v3123_v53  ;;  %v2493_v53 = vld [vmem:[%s3931_s3] sm:$0xf] }
  0x1a   :  { %v625_v6 = vsel %vm623_vm2, %v611_v5, 0  ;;  %v3128_v5 = vld [vmem:[%s3930_s4 + $0x10] sm:$0xff] }
  0x1c   :  { %352 = vmatpush.bf16.msrb.mxu1 %v3116_v30 }
  0x1d   :  { %456 = vmatpush.bf16.msrb.mxu3 %v3122_v55  ;;  %v3125_v55 = vld [vmem:[%s3931_s3] sm:$0x70] }
  0x20   :  { %353 = vmatpush.bf16.msrb.mxu1 %v3115_v31 }
  0x21   :  { %457 = vmatpush.bf16.msrb.mxu3 %v3121_v56  ;;  %v2500_v56 = vld [vmem:[%s3931_s3 + $0x8] sm:$0xf] }
  0x23   :  { %2352 = vmatmul.msk.bf16.gmra.mxu0 %vm79_vm0, %v2350_v12  ;;  %2366 = vmatmul.msk.bf16.gmra.mxu1 %vm79_vm0, %v2364_v13  ;;  %v3137_v12 = vld [vmem:[%s3930_s4 + $0x54] sm:$0xff] }
  0x33   :  { %2423 = vmatmul.msk.bf16.vlgmr.msrb.gmra.mxu0 %vm79_vm0, %v3113_v16  ;;  %v3135_v16 = vld [vmem:[%s3930_s4 + $0x44] sm:$0xff] }
  0x43   :  { %2424 = vmatmul.msk.bf16.gmra.mxu0 %vm79_vm0, %v2422_v19 }
  0x90   :  { %v95_v28 = vpop.f32.mrf.mxu0  ;;  %v145_v29 = vpop.f32.mrf.mxu1 }
  0x98   :  { %v97_v32 = vpop.f32.mrf.mxu0  ;;  %v147_v33 = vpop.f32.mrf.mxu1 }
  0x99   :  { %v105_v34 = vpack.c.bf16 %v97_v32, %v95_v28  ;;  %v155_v35 = vpack.c.bf16 %v147_v33, %v145_v29 }
  0x9b   :  { %2391 = vmatmul.msk.bf16.vlgmr.msra.gmra.mxu2 %vm190_vm1, %v155_v35  ;;  %2409 = vmatmul.msk.bf16.vlgmr.msra.gmra.mxu3 %vm190_vm1, %v105_v34  ;;  %v531_v35 = vld [vmem:[%s3930_s4 + $0x38] sm:$0xf] }
  0x9c   :  { %627 = vmatpush.bf16.msra.mxu2 %v625_v6  ;;  %v3148_v6 = vld [vmem:[%s3930_s4 + $0xa8] sm:$0xff] }
  0xa0   :  { %v100_v36 = vpop.f32.mrf.mxu0  ;;  %v150_v37 = vpop.f32.mrf.mxu1  ;;  %628 = vmatpush.bf16.msra.mxu2 %v3140_v8  ;;  %v3147_v8 = vld [vmem:[%s3930_s4 + $0xa0] sm:$0xff] }
  0xa4   :  { %629 = vmatpush.bf16.msra.mxu2 %v3139_v9  ;;  %v3126_v9 = vld [vmem:[%s3930_s4] sm:$0xff] }
  0xa8   :  { %v102_v38 = vpop.f32.mrf.mxu0  ;;  %v152_v39 = vpop.f32.mrf.mxu1  ;;  %630 = vmatpush.bf16.msra.mxu2 %v3138_v11  ;;  %v3145_v11 = vld [vmem:[%s3930_s4 + $0x90] sm:$0xff] }
  0xa9   :  { %v106_v40 = vpack.c.bf16 %v102_v38, %v100_v36  ;;  %v156_v41 = vpack.c.bf16 %v152_v39, %v150_v37  ;;  %v670_v38 = vunpack.c.l.b16 %v531_v35  ;;  %v2597_v39 = vld [vmem:[%s3930_s4 + $0xb0] sm:$0xf]  ;;  %v3152_v35 = vld [vmem:[%s3930_s4 + $0xc4] sm:$0xff] }
  0xab   :  { %2392 = vmatmul.msk.bf16.gmra.mxu2 %vm190_vm1, %v156_v41  ;;  %2410 = vmatmul.msk.bf16.gmra.mxu3 %vm190_vm1, %v106_v40 }
  0xac   :  { %631 = vmatpush.bf16.msra.mxu2 %v3137_v12  ;;  %v3144_v12 = vld [vmem:[%s3930_s4 + $0x88] sm:$0xff] }
  0xb0   :  { %v295_v42 = vpop.f32.mrf.mxu0  ;;  %632 = vmatpush.bf16.msra.mxu2 %v3136_v14  ;;  %v3142_v14 = vld [vmem:[%s3930_s4 + $0x78] sm:$0xff] }
  0xb4   :  { %633 = vmatpush.bf16.msra.mxu2 %v3135_v16 }
  0xb8   :  { %v297_v44 = vpop.f32.mrf.mxu0  ;;  %634 = vmatpush.bf16.msra.mxu2 %v3134_v17 }
  0xb9   :  { %v305_v45 = vpack.c.bf16 %v297_v44, %v295_v42  ;;  %v678_v42 = vpack.c.b16 %v670_v38, %v670_v38  ;;  %v777_v44 = vunpack.c.l.b16 %v2597_v39 }
  0xbb   :  { %2449 = vmatmul.msk.bf16.vlgmr.msrb.gmra.mxu1 %vm190_vm1, %v305_v45  ;;  %2463 = vmatmul.msk.bf16.vlgmr.msrb.gmra.mxu2 %vm79_vm0, %v3119_v43  ;;  %v690_v47 = vsel %vm623_vm2, %v678_v42, 0 }
  0xbc   :  { %692 = vmatpush.bf16.msra.mxu3 %v690_v47 }
  0xc0   :  { %v300_v46 = vpop.f32.mrf.mxu0 }
  0xc8   :  { %v302_v50 = vpop.f32.mrf.mxu0 }
  0xc9   :  { %v306_v51 = vpack.c.bf16 %v302_v50, %v300_v46  ;;  %v3132_v50 = vld [vmem:[%s3930_s4 + $0x30] sm:$0xff] }
  0xca   :  { %693 = vmatpush.bf16.msra.mxu3 %v3132_v50  ;;  %v2696_v50 = vld [vmem:[%s3932_s6 + $0x34] sm:$0xf] }
  0xcb   :  { %2450 = vmatmul.msk.bf16.gmra.mxu1 %vm190_vm1, %v306_v51  ;;  %2464 = vmatmul.msk.bf16.gmra.mxu2 %vm79_vm0, %v2462_v49 }
 0x11e   :  { %v206_v54 = vpop.f32.mrf.mxu2  ;;  %v255_v2 = vpop.f32.mrf.mxu3 }
 0x11f   :  { %v256_v29 = vadd.f32 %v255_v2, %v206_v54  ;;  %v785_v54 = vpack.c.b16 %v777_v44, %v777_v44  ;;  %v2580_v2 = vld [vmem:[%s3931_s3 + $0x10] sm:$0xf] }
 0x120   :  { %v2581_v4 = vor.u32 %v3141_v3, %v2580_v2  ;;  %v3161_v3 = vld [vmem:[%s3933_s5 + $0x8] sm:$0x30] }
 0x126   :  { %v208_v57 = vpop.f32.mrf.mxu2  ;;  %v257_v7 = vpop.f32.mrf.mxu3 }
 0x127   :  { %v258_v25 = vadd.f32 %v257_v7, %v208_v57  ;;  %v3133_v57 = vld [vmem:[%s3931_s3 + $0x8] sm:$0x70] }
 0x128   :  { %v3127_v7 = vld [vmem:[%s3930_s4 + $0x8] sm:$0xff] }
 0x12e   :  { %v211_v58 = vpop.f32.mrf.mxu2  ;;  %v260_v10 = vpop.f32.mrf.mxu3 }
 0x12f   :  { %v261_v23 = vadd.f32 %v260_v10, %v211_v58  ;;  %v3146_v10 = vld [vmem:[%s3930_s4 + $0x98] sm:$0xff] }
 0x136   :  { %v213_v59 = vpop.f32.mrf.mxu2  ;;  %v262_v15 = vpop.f32.mrf.mxu3 }
 0x137   :  { %v263_v27 = vadd.f32 %v262_v15, %v213_v59  ;;  %v2648_v15 = vld [vmem:[%s3930_s4 + $0xec] sm:$0xf] }
 0x138   :  { %v355_v13 = vpop.f32.mrf.mxu1  ;;  %v886_v16 = vunpack.c.l.b16 %v2648_v15  ;;  %v3165_v15 = vld [vmem:[%s3933_s5 + $0x10] sm:$0x30] }
 0x139   :  { %v365_v32 = vadd.f32 %v355_v13, %v256_v29  ;;  %v3143_v13 = vld [vmem:[%s3930_s4 + $0x80] sm:$0xff] }
 0x13a   :  { %v894_v17 = vpack.c.b16 %v886_v16, %v886_v16 }
 0x13e   :  { %v399_v60 = vpop.f32.mrf.mxu2 }
 0x140   :  { %v357_v18 = vpop.f32.mrf.mxu1 }
 0x141   :  { %v366_v30 = vadd.f32 %v357_v18, %v258_v25 }
 0x146   :  { %v401_v61 = vpop.f32.mrf.mxu2 }
 0x147   :  { %v409_v62 = vpack.c.bf16 %v401_v61, %v399_v60  ;;  %v3131_v60 = vld [vmem:[%s3930_s4 + $0x28] sm:$0xff]  ;;  %v2494_v61 = vor.u32 %v3125_v55, %v2493_v53 }
 0x148   :  { %v360_v21 = vpop.f32.mrf.mxu1  ;;  %694 = vmatpush.bf16.msra.mxu3 %v3131_v60 }
 0x149   :  { %2489 = vmatmul.msk.bf16.vlgmr.msrb.gmra.mxu3 %vm190_vm1, %v409_v62  ;;  %v367_v24 = vadd.f32 %v360_v21, %v261_v23  ;;  %v2501_v62 = vor.u32 %v3133_v57, %v2500_v56  ;;  %v1014_v56 = vunpack.c.l.b16 %v2696_v50 }
 0x14e   :  { %v404_v63 = vpop.f32.mrf.mxu2 }
 0x150   :  { %v362_v26 = vpop.f32.mrf.mxu1 }
 0x151   :  { %v368_v31 = vadd.f32 %v362_v26, %v263_v27  ;;  %v2631_v26 = vld [vmem:[%s3931_s3 + $0x18] sm:$0xf]  ;;  %v3149_v27 = vld [vmem:[%s3931_s3 + $0x18] sm:$0x70] }
 0x156   :  { %v406_v0 = vpop.f32.mrf.mxu2 }
 0x157   :  { %v410_v1 = vpack.c.bf16 %v406_v0, %v404_v63  ;;  %v797_v63 = vsel %vm623_vm2, %v785_v54, 0  ;;  %v3130_v0 = vld [vmem:[%s3930_s4 + $0x20] sm:$0xff] }
 0x158   :  { %695 = vmatpush.bf16.msra.mxu3 %v3130_v0  ;;  %v2687_v0 = vld [vmem:[%s3933_s5 + $0x8] sm:$0xf] }
 0x159   :  { %2490 = vmatmul.msk.bf16.gmra.mxu3 %vm190_vm1, %v410_v1  ;;  %v3129_v1 = vld [vmem:[%s3930_s4 + $0x18] sm:$0xff] }
 0x15c   :  { %696 = vmatpush.bf16.msra.mxu3 %v3129_v1 }
 0x160   :  { %697 = vmatpush.bf16.msra.mxu3 %v3128_v5  ;;  %v3157_v5 = vld [vmem:[%s3933_s5] sm:$0x30] }
 0x164   :  { %698 = vmatpush.bf16.msra.mxu3 %v3127_v7 }
 0x168   :  { %699 = vmatpush.bf16.msra.mxu3 %v3126_v9  ;;  %v2688_v9 = vor.u32 %v3161_v3, %v2687_v0  ;;  %v3178_v0 = vld [vmem:[%s3934_s8 + $0x28] sm:$0xff]  ;;  %v3177_v3 = vld [vmem:[%s3934_s8 + $0x20] sm:$0xff] }
 0x1cc   :  { %v459_v19 = vpop.f32.mrf.mxu3 }
 0x1cd   :  { %v469_v40 = vadd.f32 %v459_v19, %v365_v32  ;;  %v3155_v32 = vld [vmem:[%s3930_s4 + $0xdc] sm:$0xff] }
 0x1cf   :  { %v477_v48 = vmul.f32 0.2, %v469_v40  ;;  %vm473_vm7 = vcmp.ge.f32.partialorder %v469_v40, 0.0 }
 0x1d1   :  { %v481_v58 = vsel %vm473_vm7, %v469_v40, %v477_v48 }
 0x1d4   :  { %v461_v20 = vpop.f32.mrf.mxu3 }
 0x1d5   :  { %v470_v33 = vadd.f32 %v461_v20, %v366_v30  ;;  %v906_v20 = vsel %vm623_vm2, %v894_v17, 0  ;;  %v3160_v17 = vld [vmem:[%s3932_s6 + $0x10] sm:$0xff] }
 0x1d6   :  { %908 = vmatpush.bf16.msrb.mxu3 %v906_v20  ;;  %v2736_v20 = vld [vmem:[%s3932_s6 + $0x50] sm:$0xf] }
 0x1d7   :  { %v478_v43 = vmul.f32 0.2, %v470_v33  ;;  %vm474_vm6 = vcmp.ge.f32.partialorder %v470_v33, 0.0 }
 0x1d9   :  { %v482_v51 = vsel %vm474_vm6, %v470_v33, %v478_v43  ;;  %v3154_v33 = vld [vmem:[%s3930_s4 + $0xd4] sm:$0xff]  ;;  %vm1601_vm6 = vcmask 392192  }
 0x1da   :  { %v485_v59 = vpack.c.bf16 %v482_v51, %v481_v58  ;;  %v966_v51 = vld [vmem:[%s3932_s6 + $0x18] sm:$0xf] }
 0x1db   :  { %v1056_v54 = vunpack.c.l.b16 %v966_v51 }
 0x1dc   :  { %v464_v22 = vpop.f32.mrf.mxu3 }
 0x1dd   :  { %v471_v28 = vadd.f32 %v464_v22, %v367_v24  ;;  %v1060_v57 = vpack.c.b16 %v1056_v54, %v1056_v54  ;;  %v3181_v54 = vld [vmem:[%s3934_s8 + $0x40] sm:$0xff] }
 0x1df   :  { %v479_v36 = vmul.f32 0.2, %v471_v28  ;;  %vm475_vm3 = vcmp.ge.f32.partialorder %v471_v28, 0.0 }
 0x1e1   :  { %v483_v45 = vsel %vm475_vm3, %v471_v28, %v479_v36  ;;  %v2632_v28 = vor.u32 %v3149_v27, %v2631_v26  ;;  %v3151_v36 = vld [vmem:[%s3930_s4 + $0xbc] sm:$0xff]  ;;  %vm1246_vm3 = vcmask 97280  }
 0x1e2   :  { %v3166_v26 = vld [vmem:[%s3932_s6 + $0x38] sm:$0xff] }
 0x1e4   :  { %v466_v34 = vpop.f32.mrf.mxu3 }
 0x1e5   :  { %v472_v37 = vadd.f32 %v466_v34, %v368_v31  ;;  %v3156_v31 = vld [vmem:[%s3930_s4 + $0xe4] sm:$0xff]  ;;  %v3153_v34 = vld [vmem:[%s3930_s4 + $0xcc] sm:$0xff] }
 0x1e6   :  { %909 = vmatpush.bf16.msrb.mxu3 %v3156_v31 }
 0x1e7   :  { %vm476_vm4 = vcmp.ge.f32.partialorder %v472_v37, 0.0  ;;  %v480_v41 = vmul.f32 0.2, %v472_v37 }
 0x1e9   :  { %v484_v46 = vsel %vm476_vm4, %v472_v37, %v480_v41  ;;  %v3150_v37 = vld [vmem:[%s3930_s4 + $0xb4] sm:$0xff]  ;;  %vm1348_vm4 = vcmask 785408  }
 0x1ea   :  { %v486_v49 = vpack.c.bf16 %v484_v46, %v483_v45  ;;  %910 = vmatpush.bf16.msrb.mxu3 %v3155_v32 }
 0x1ec   :  { %v500_v52 = vsel %vm498_vm5, %v486_v49, 0 }
 0x1ed   :  { %508 = vmatpush.bf16.msra.mxu0 %v500_v52  ;;  %549 = vmatpush.bf16.msra.mxu1 %v500_v52 }
 0x1ee   :  { %832 = vmatpush.bf16.msrb.mxu2 %v500_v52  ;;  %911 = vmatpush.bf16.msrb.mxu3 %v3154_v33 }
 0x1f1   :  { %509 = vmatpush.bf16.msra.mxu0 %v485_v59  ;;  %550 = vmatpush.bf16.msra.mxu1 %v485_v59 }
 0x1f2   :  { %833 = vmatpush.bf16.msrb.mxu2 %v485_v59  ;;  %912 = vmatpush.bf16.msrb.mxu3 %v3153_v34  ;;  %v2754_v34 = vld [vmem:[%s3933_s5 + $0x18] sm:$0xf] }
 0x1f4   :  { %2495 = vmatmul.msk.bf16.vlgmr.msra.gmra.mxu0 %vm494_vm8, %v2494_v61  ;;  %2502 = vmatmul.msk.bf16.vlgmr.msra.gmra.mxu1 %vm494_vm8, %v2501_v62  ;;  %v1068_v61 = vsel %vm623_vm2, %v1060_v57, 0 }
 0x1f5   :  { %723 = vmatpush.bf16.msrb.mxu0 %v500_v52  ;;  %799 = vmatpush.bf16.msrb.mxu1 %v797_v63  ;;  %v1018_v63 = vpack.c.b16 %v1014_v56, %v1014_v56  ;;  %v3179_v56 = vld [vmem:[%s3934_s8 + $0x30] sm:$0xff] }
 0x1f6   :  { %913 = vmatpush.bf16.msrb.mxu3 %v3152_v35  ;;  %v3169_v35 = vld [vmem:[%s3933_s5 + $0x18] sm:$0x30] }
 0x1f7   :  { %v1027_v7 = vsel %vm623_vm2, %v1018_v63, 0 }
 0x1f9   :  { %724 = vmatpush.bf16.msrb.mxu0 %v485_v59  ;;  %800 = vmatpush.bf16.msrb.mxu1 %v3148_v6 }
 0x1fa   :  { %914 = vmatpush.bf16.msrb.mxu3 %v3151_v36  ;;  %v2755_v36 = vor.u32 %v3169_v35, %v2754_v34  ;;  %v2881_v34 = vld [vmem:[%s3935_s7 + $0xc] sm:$0x7] }
 0x1fd   :  { %801 = vmatpush.bf16.msrb.mxu1 %v3147_v8 }
 0x1fe   :  { %915 = vmatpush.bf16.msrb.mxu3 %v3150_v37 }
 0x201   :  { %802 = vmatpush.bf16.msrb.mxu1 %v3146_v10 }
 0x204   :  { %2582 = vmatmul.msk.bf16.vlgmr.msrb.gmra.mxu0 %vm494_vm8, %v2581_v4  ;;  %v2680_v4 = vld [vmem:[%s3933_s5] sm:$0xf] }
 0x205   :  { %803 = vmatpush.bf16.msrb.mxu1 %v3145_v11  ;;  %v2681_v10 = vor.u32 %v3157_v5, %v2680_v4  ;;  %v3164_v11 = vld [vmem:[%s3932_s6 + $0x2c] sm:$0xff] }
 0x209   :  { %804 = vmatpush.bf16.msrb.mxu1 %v3144_v12  ;;  %v3163_v12 = vld [vmem:[%s3932_s6 + $0x24] sm:$0xff] }
 0x20d   :  { %805 = vmatpush.bf16.msrb.mxu1 %v3143_v13  ;;  %v3162_v13 = vld [vmem:[%s3932_s6 + $0x1c] sm:$0xff] }
 0x211   :  { %806 = vmatpush.bf16.msrb.mxu1 %v3142_v14  ;;  %v2727_v14 = vld [vmem:[%s3933_s5 + $0x10] sm:$0xf] }
 0x212   :  { %v2728_v16 = vor.u32 %v3165_v15, %v2727_v14  ;;  %v1245_v14 = vld [vmem:[%s3935_s7] sm:$0x7]  ;;  %v2778_v15 = vld [vmem:[%s3935_s7 + $0x4] sm:$0x7] }
 0x215   :  { %1074 = vmatpush.bf16.msra.mxu1 %v1068_v61 }
 0x219   :  { %1075 = vmatpush.bf16.msra.mxu1 %v3160_v17  ;;  %v3176_v17 = vld [vmem:[%s3934_s8 + $0x18] sm:$0xff] }
 0x271   :  { %v511_v18 = vpop.f32.mrf.mxu0  ;;  %v552_v19 = vpop.f32.mrf.mxu1 }
 0x279   :  { %v513_v21 = vpop.f32.mrf.mxu0  ;;  %v554_v22 = vpop.f32.mrf.mxu1 }
 0x27a   :  { %v516_v23 = vpack.c.bf16 %v513_v21, %v511_v18  ;;  %v557_v24 = vpack.c.bf16 %v554_v22, %v552_v19  ;;  %v3159_v18 = vld [vmem:[%s3932_s6 + $0x8] sm:$0xff]  ;;  %v3158_v19 = vld [vmem:[%s3932_s6] sm:$0xff]  ;;  %v1131_v21 = vunpack.c.l.b16 %v2736_v20 }
 0x27b   :  { %1076 = vmatpush.bf16.msra.mxu1 %v3159_v18  ;;  %v3175_v18 = vld [vmem:[%s3934_s8 + $0x10] sm:$0xff]  ;;  %v3189_v20 = vld [vmem:[%s3934_s8 + $0x80] sm:$0xff] }
 0x27c   :  { %2546 = vmatmul.msk.bf16.vlgmr.msra.gmra.mxu2 %vm619_vm9, %v557_v24  ;;  %2575 = vmatmul.msk.bf16.vlgmr.msra.gmra.mxu3 %vm619_vm9, %v516_v23  ;;  %v1135_v22 = vpack.c.b16 %v1131_v21, %v1131_v21  ;;  %v3168_v24 = vld [vmem:[%s3932_s6 + $0x48] sm:$0xff]  ;;  %v3173_v21 = vld [vmem:[%s3934_s8] sm:$0xff] }
 0x27e   :  { %v1143_v23 = vsel %vm623_vm2, %v1135_v22, 0  ;;  %v3188_v22 = vld [vmem:[%s3934_s8 + $0x78] sm:$0xff] }
 0x27f   :  { %1077 = vmatpush.bf16.msra.mxu1 %v3158_v19  ;;  %1149 = vmatpush.bf16.msra.mxu3 %v1143_v23  ;;  %v3174_v19 = vld [vmem:[%s3934_s8 + $0x8] sm:$0xff]  ;;  %v3187_v23 = vld [vmem:[%s3934_s8 + $0x70] sm:$0xff] }
 0x281   :  { %v726_v25 = vpop.f32.mrf.mxu0 }
 0x283   :  { %1150 = vmatpush.bf16.msra.mxu3 %v3168_v24  ;;  %v3186_v24 = vld [vmem:[%s3934_s8 + $0x68] sm:$0xff] }
 0x289   :  { %v728_v29 = vpop.f32.mrf.mxu0 }
 0x28a   :  { %v731_v30 = vpack.c.bf16 %v728_v29, %v726_v25  ;;  %v3167_v25 = vld [vmem:[%s3932_s6 + $0x40] sm:$0xff] }
 0x28b   :  { %1151 = vmatpush.bf16.msra.mxu3 %v3167_v25  ;;  %v3185_v25 = vld [vmem:[%s3934_s8 + $0x60] sm:$0xff] }
 0x28c   :  { %2626 = vmatmul.msk.bf16.vlgmr.msrb.gmra.mxu1 %vm619_vm9, %v731_v30  ;;  %2633 = vmatmul.msk.bf16.vlgmr.msrb.gmra.mxu2 %vm494_vm8, %v2632_v28 }
 0x28f   :  { %1152 = vmatpush.bf16.msra.mxu3 %v3166_v26  ;;  %v3196_v26 = vld [vmem:[%s3934_s8 + $0xb8] sm:$0xff] }
 0x2ff   :  { %v636_v38 = vpop.f32.mrf.mxu2  ;;  %v701_v43 = vpop.f32.mrf.mxu3 }
 0x300   :  { %v702_v47 = vadd.f32 %v701_v43, %v636_v38  ;;  %v3172_v43 = vld [vmem:[%s3932_s6 + $0x64] sm:$0xff] }
 0x307   :  { %v638_v39 = vpop.f32.mrf.mxu2  ;;  %v703_v44 = vpop.f32.mrf.mxu3 }
 0x308   :  { %v704_v52 = vadd.f32 %v703_v44, %v638_v39  ;;  %v2763_v39 = vld [vmem:[%s3932_s6 + $0x6c] sm:$0xf]  ;;  %v3171_v44 = vld [vmem:[%s3932_s6 + $0x5c] sm:$0xff] }
 0x309   :  { %v808_v45 = vpop.f32.mrf.mxu1 }
 0x30a   :  { %v813_v48 = vadd.f32 %v808_v45, %v702_v47  ;;  %v3170_v45 = vld [vmem:[%s3932_s6 + $0x54] sm:$0xff] }
 0x30f   :  { %v835_v40 = vpop.f32.mrf.mxu2 }
 0x311   :  { %v810_v49 = vpop.f32.mrf.mxu1 }
 0x312   :  { %v814_v55 = vadd.f32 %v810_v49, %v704_v52  ;;  %v3183_v52 = vld [vmem:[%s3934_s8 + $0x50] sm:$0xff] }
 0x317   :  { %v837_v41 = vpop.f32.mrf.mxu2 }
 0x318   :  { %v840_v42 = vpack.c.bf16 %v837_v41, %v835_v40  ;;  %v1208_v40 = vunpack.c.l.b16 %v2763_v39  ;;  %v3193_v39 = vld [vmem:[%s3934_s8 + $0xa0] sm:$0xff] }
 0x31a   :  { %2677 = vmatmul.msk.bf16.vlgmr.msrb.gmra.mxu3 %vm619_vm9, %v840_v42  ;;  %v1212_v41 = vpack.c.b16 %v1208_v40, %v1208_v40  ;;  %v3192_v40 = vld [vmem:[%s3934_s8 + $0x98] sm:$0xff] }
 0x31c   :  { %v1220_v42 = vsel %vm623_vm2, %v1212_v41, 0  ;;  %vm1250_vm2 = vcmask 1045504   ;;  %v3191_v41 = vld [vmem:[%s3934_s8 + $0x90] sm:$0xff] }
 0x31d   :  { %1226 = vmatpush.bf16.msrb.mxu1 %v1220_v42 }
 0x321   :  { %1227 = vmatpush.bf16.msrb.mxu1 %v3172_v43 }
 0x325   :  { %1228 = vmatpush.bf16.msrb.mxu1 %v3171_v44 }
 0x329   :  { %1229 = vmatpush.bf16.msrb.mxu1 %v3170_v45 }
 0x39d   :  { %v917_v46 = vpop.f32.mrf.mxu3 }
 0x39e   :  { %v922_v53 = vadd.f32 %v917_v46, %v813_v48  ;;  %v3184_v46 = vld [vmem:[%s3934_s8 + $0x58] sm:$0xff] }
 0x3a0   :  { %v926_v59 = vmul.f32 0.2, %v922_v53  ;;  %vm924_vm10 = vcmp.ge.f32.partialorder %v922_v53, 0.0 }
 0x3a2   :  { %v928_v1 = vsel %vm924_vm10, %v922_v53, %v926_v59  ;;  %v3182_v53 = vld [vmem:[%s3934_s8 + $0x48] sm:$0xff] }
 0x3a5   :  { %v919_v58 = vpop.f32.mrf.mxu3 }
 0x3a6   :  { %v923_v60 = vadd.f32 %v919_v58, %v814_v55  ;;  %v3180_v55 = vld [vmem:[%s3934_s8 + $0x38] sm:$0xff] }
 0x3a8   :  { %vm925_vm11 = vcmp.ge.f32.partialorder %v923_v60, 0.0  ;;  %v927_v62 = vmul.f32 0.2, %v923_v60 }
 0x3aa   :  { %v929_v2 = vsel %vm925_vm11, %v923_v60, %v927_v62  ;;  %vm1679_vm11 = vcmask 1042432  }
 0x3ab   :  { %v930_v6 = vpack.c.bf16 %v929_v2, %v928_v1 }
 0x3ad   :  { %v943_v8 = vsel %vm498_vm5, %v930_v6, 0  ;;  %vm1593_vm5 = vcmask 390144  }
 0x3ae   :  { %952 = vmatpush.bf16.msra.mxu0 %v943_v8  ;;  %985 = vmatpush.bf16.msra.mxu2 %v943_v8 }
 0x3b1   :  { %2689 = vmatmul.msk.bf16.vlgmr.msra.gmra.mxu2 %vm938_vm12, %v2688_v9  ;;  %2682 = vmatmul.msk.bf16.vlgmr.msra.gmra.mxu0 %vm938_vm12, %v2681_v10 }
 0x3b2   :  { %1033 = vmatpush.bf16.msrb.mxu0 %v1027_v7  ;;  %1102 = vmatpush.bf16.msrb.mxu2 %v943_v8 }
 0x3b6   :  { %1034 = vmatpush.bf16.msrb.mxu0 %v3164_v11 }
 0x3ba   :  { %1035 = vmatpush.bf16.msrb.mxu0 %v3163_v12  ;;  %v3190_v12 = vld [vmem:[%s3934_s8 + $0x88] sm:$0xff] }
 0x3be   :  { %1036 = vmatpush.bf16.msrb.mxu0 %v3162_v13 }
 0x3c1   :  { %2729 = vmatmul.msk.bf16.vlgmr.msrb.gmra.mxu2 %vm938_vm12, %v2728_v16  ;;  %v2842_v16 = vld [vmem:[%s3935_s7 + $0x8] sm:$0x7] }
 0x3c2   :  { %1179 = vmatpush.bf16.msra.mxu0 %v943_v8 }
 0x42e   :  { %v954_v27 = vpop.f32.mrf.mxu0 }
 0x434   :  { %v987_v28 = vpop.f32.mrf.mxu2 }
 0x436   :  { %v956_v29 = vpop.f32.mrf.mxu0 }
 0x437   :  { %v959_v30 = vpack.c.bf16 %v956_v29, %v954_v27 }
 0x439   :  { %2722 = vmatmul.msk.bf16.vlgmr.msra.gmra.mxu1 %vm1022_vm13, %v959_v30 }
 0x43a   :  { %1406 = vmatpush.bf16.msra.mxu1 %v3178_v0 }
 0x43c   :  { %v989_v31 = vpop.f32.mrf.mxu2 }
 0x43d   :  { %v992_v32 = vpack.c.bf16 %v989_v31, %v987_v28 }
 0x43e   :  { %1407 = vmatpush.bf16.msra.mxu1 %v3177_v3 }
 0x43f   :  { %2709 = vmatmul.msk.bf16.vlgmr.msrb.gmra.mxu0 %vm1022_vm13, %v992_v32 }
 0x440   :  { %1354 = vmatpush.bf16.msrb.mxu0 %v3184_v46 }
 0x442   :  { %1408 = vmatpush.bf16.msra.mxu1 %v3176_v17  ;;  %v3201_v17 = vld [vmem:[%s3937_s11 + $0x20] sm:$0xff] }
 0x444   :  { %v1104_v33 = vpop.f32.mrf.mxu2  ;;  %1355 = vmatpush.bf16.msrb.mxu0 %v3183_v52 }
 0x446   :  { %1409 = vmatpush.bf16.msra.mxu1 %v3175_v18  ;;  %v3200_v18 = vld [vmem:[%s3937_s11 + $0x18] sm:$0xff] }
 0x448   :  { %1356 = vmatpush.bf16.msrb.mxu0 %v3182_v53  ;;  %v1592_v53 = vld [vmem:[%s3936_s9 + $0x28] sm:$0xff] }
 0x44a   :  { %1410 = vmatpush.bf16.msra.mxu1 %v3174_v19 }
 0x44c   :  { %v1106_v37 = vpop.f32.mrf.mxu2  ;;  %1357 = vmatpush.bf16.msrb.mxu0 %v3181_v54  ;;  %v1591_v54 = vld [vmem:[%s3936_s9 + $0x20] sm:$0xff] }
 0x44d   :  { %v1109_v38 = vpack.c.bf16 %v1106_v37, %v1104_v33  ;;  %v3195_v37 = vld [vmem:[%s3934_s8 + $0xb0] sm:$0xff] }
 0x44e   :  { %1411 = vmatpush.bf16.msra.mxu1 %v3173_v21 }
 0x44f   :  { %2749 = vmatmul.msk.bf16.vlgmr.msra.gmra.mxu3 %vm1022_vm13, %v1109_v38  ;;  %2756 = vmatmul.msk.bf16.vlgmr.msra.gmra.mxu0 %vm938_vm12, %v2755_v36  ;;  %v3194_v38 = vld [vmem:[%s3934_s8 + $0xa8] sm:$0xff]  ;;  %vm1675_vm12 = vcmask 48128  }
 0x450   :  { %1358 = vmatpush.bf16.msrb.mxu0 %v3180_v55  ;;  %v1590_v55 = vld [vmem:[%s3936_s9 + $0x18] sm:$0xff] }
 0x454   :  { %1359 = vmatpush.bf16.msrb.mxu0 %v3179_v56  ;;  %v1589_v56 = vld [vmem:[%s3936_s9 + $0x10] sm:$0xff] }
 0x4b6   :  { %v1079_v57 = vpop.f32.mrf.mxu1 }
 0x4bc   :  { %v1038_v47 = vpop.f32.mrf.mxu0 }
 0x4bd   :  { %v1080_v61 = vadd.f32 %v1079_v57, %v1038_v47  ;;  %v1588_v57 = vld [vmem:[%s3936_s9 + $0x8] sm:$0xff] }
 0x4be   :  { %v1081_v58 = vpop.f32.mrf.mxu1 }
 0x4c4   :  { %v1040_v48 = vpop.f32.mrf.mxu0 }
 0x4c5   :  { %v1082_v1 = vadd.f32 %v1081_v58, %v1040_v48  ;;  %v1587_v58 = vld [vmem:[%s3936_s9] sm:$0xff] }
 0x4cc   :  { %v1181_v49 = vpop.f32.mrf.mxu0 }
 0x4d2   :  { %v1154_v59 = vpop.f32.mrf.mxu3 }
 0x4d3   :  { %v1159_v62 = vadd.f32 %v1154_v59, %v1080_v61 }
 0x4d4   :  { %v1183_v50 = vpop.f32.mrf.mxu0 }
 0x4d5   :  { %v1186_v51 = vpack.c.bf16 %v1183_v50, %v1181_v49 }
 0x4d7   :  { %2776 = vmatmul.msk.bf16.vlgmr.msrb.gmra.mxu1 %vm1022_vm13, %v1186_v51 }
 0x4d8   :  { %1575 = vmatpush.bf16.msrb.mxu1 %v3196_v26 }
 0x4da   :  { %v1156_v63 = vpop.f32.mrf.mxu3 }
 0x4db   :  { %v1160_v4 = vadd.f32 %v1156_v63, %v1082_v1 }
 0x4dc   :  { %1576 = vmatpush.bf16.msrb.mxu1 %v3195_v37  ;;  %v3199_v37 = vld [vmem:[%s3937_s11 + $0x10] sm:$0xff] }
 0x4e0   :  { %1577 = vmatpush.bf16.msrb.mxu1 %v3194_v38  ;;  %v3198_v38 = vld [vmem:[%s3937_s11 + $0x8] sm:$0xff] }
 0x4e4   :  { %1578 = vmatpush.bf16.msrb.mxu1 %v3193_v39  ;;  %v3197_v39 = vld [vmem:[%s3937_s11] sm:$0xff] }
 0x4e8   :  { %1579 = vmatpush.bf16.msrb.mxu1 %v3192_v40  ;;  %v3205_v40 = vld [vmem:[%s3937_s11 + $0x40] sm:$0xff] }
 0x4ec   :  { %1580 = vmatpush.bf16.msrb.mxu1 %v3191_v41  ;;  %v3204_v41 = vld [vmem:[%s3937_s11 + $0x38] sm:$0xff] }
 0x554   :  { %v1231_v60 = vpop.f32.mrf.mxu1 }
 0x555   :  { %v1236_v2 = vadd.f32 %v1231_v60, %v1159_v62 }
 0x557   :  { %v1240_v6 = vmul.f32 0.2, %v1236_v2  ;;  %vm1238_vm14 = vcmp.ge.f32.partialorder %v1236_v2, 0.0 }
 0x559   :  { %v1242_v9 = vsel %vm1238_vm14, %v1236_v2, %v1240_v6  ;;  %vm1928_vm14 = vcmask 1041408  }
 0x55c   :  { %v1233_v5 = vpop.f32.mrf.mxu1 }
 0x55d   :  { %v1237_v7 = vadd.f32 %v1233_v5, %v1160_v4 }
 0x55f   :  { %vm1239_vm15 = vcmp.ge.f32.partialorder %v1237_v7, 0.0  ;;  %v1241_v8 = vmul.f32 0.2, %v1237_v7 }
 0x561   :  { %v1243_v10 = vsel %vm1239_vm15, %v1237_v7, %v1241_v8  ;;  %vm1924_vm15 = vcmask 31744  }
 0x562   :  { %v1244_v11 = vpack.c.bf16 %v1243_v10, %v1242_v9 }
 0x564   :  { %v1252_v13 = vsel %vm1250_vm2, %v1244_v11, 0 }
 0x565   :  { %1261 = vmatpush.bf16.msra.mxu2 %v1252_v13  ;;  %1292 = vmatpush.bf16.msrb.mxu3 %v1252_v13 }
 0x566   :  { %1514 = vmatpush.bf16.msra.mxu0 %v1252_v13 }
 0x568   :  { %2777 = vmatmul.msk.bf16.vlgmr.msra.gmra.mxu2 %vm1246_vm3, %v1245_v14  ;;  %2779 = vmatmul.msk.bf16.vlgmr.msrb.gmra.mxu3 %vm1246_vm3, %v2778_v15 }
 0x569   :  { %1429 = vmatpush.bf16.msrb.mxu2 %v1252_v13  ;;  %1490 = vmatpush.bf16.msra.mxu3 %v3190_v12 }
 0x56d   :  { %1491 = vmatpush.bf16.msra.mxu3 %v3189_v20  ;;  %1615 = vmatpush.msra.mxu2 %v1592_v53 }
 0x56f   :  { %1616 = vmatpush.msra.mxu2 %v1591_v54 }
 0x571   :  { %1492 = vmatpush.bf16.msra.mxu3 %v3188_v22  ;;  %1617 = vmatpush.msra.mxu2 %v1590_v55 }
 0x573   :  { %1618 = vmatpush.msra.mxu2 %v1589_v56 }
 0x575   :  { %1493 = vmatpush.bf16.msra.mxu3 %v3187_v23  ;;  %1619 = vmatpush.msra.mxu2 %v1588_v57 }
 0x577   :  { %1620 = vmatpush.msra.mxu2 %v1587_v58 }
 0x578   :  { %2843 = vmatmul.msk.bf16.vlgmr.msrb.gmra.mxu2 %vm1246_vm3, %v2842_v16  ;;  %v3202_v16 = vld [vmem:[%s3937_s11 + $0x28] sm:$0xff] }
 0x579   :  { %1494 = vmatpush.bf16.msra.mxu3 %v3186_v24 }
 0x57d   :  { %1495 = vmatpush.bf16.msra.mxu3 %v3185_v25 }
 0x581   :  { %1648 = vmatpush.msrb.mxu3 %v1592_v53  ;;  %v3208_v53 = vld [vmem:[%s3937_s11 + $0x58] sm:$0xff] }
 0x583   :  { %1649 = vmatpush.msrb.mxu3 %v1591_v54  ;;  %v3207_v54 = vld [vmem:[%s3937_s11 + $0x50] sm:$0xff] }
 0x585   :  { %1650 = vmatpush.msrb.mxu3 %v1590_v55  ;;  %v3206_v55 = vld [vmem:[%s3937_s11 + $0x48] sm:$0xff] }
 0x587   :  { %1651 = vmatpush.msrb.mxu3 %v1589_v56  ;;  %v3216_v56 = vld [vmem:[%s3939_s13 + $0x38] sm:$0xff] }
 0x589   :  { %1652 = vmatpush.msrb.mxu3 %v1588_v57 }
 0x58b   :  { %1653 = vmatpush.msrb.mxu3 %v1587_v58 }
 0x5eb   :  { %v1263_v27 = vpop.f32.mrf.mxu2  ;;  %v1294_v28 = vpop.f32.mrf.mxu3 }
 0x5ec   :  { %v1267_v29 = vpack.c.bf16 %v1263_v27, %v1263_v27  ;;  %v1298_v30 = vpack.c.bf16 %v1294_v28, %v1294_v28 }
 0x5ee   :  { %2816 = vmatmul.msk.bf16.vlgmr.msrb.gmra.mxu0 %vm1348_vm4, %v1298_v30  ;;  %2841 = vmatmul.msk.bf16.vlgmr.msra.gmra.mxu1 %vm1348_vm4, %v1267_v29 }
 0x5ef   :  { %1789 = vmatpush.bf16.msra.mxu1 %v3199_v37  ;;  %v3222_v37 = vld [vmem:[%s3939_s13 + $0x68] sm:$0xff] }
 0x5f3   :  { %v1265_v31 = vpop.f32.mrf.mxu2  ;;  %v1296_v32 = vpop.f32.mrf.mxu3  ;;  %1790 = vmatpush.bf16.msra.mxu1 %v3198_v38  ;;  %v3221_v38 = vld [vmem:[%s3939_s13 + $0x60] sm:$0xff] }
 0x5f7   :  { %1791 = vmatpush.bf16.msra.mxu1 %v3197_v39 }
 0x5fb   :  { %v1431_v33 = vpop.f32.mrf.mxu2 }
 0x5fc   :  { %v1435_v35 = vpack.c.bf16 %v1431_v33, %v1431_v33 }
 0x5fe   :  { %2880 = vmatmul.msk.bf16.vlgmr.msra.gmra.mxu3 %vm1348_vm4, %v1435_v35  ;;  %2882 = vmatmul.msk.bf16.vlgmr.msra.gmra.mxu0 %vm1246_vm3, %v2881_v34  ;;  %v1674_v34 = vld [vmem:[%s3938_s10] sm:$0x3]  ;;  %v2923_v35 = vld [vmem:[%s3938_s10 + $0x2] sm:$0x3] }
 0x5ff   :  { %1755 = vmatpush.bf16.msra.mxu3 %v3202_v16  ;;  %v3044_v16 = vld [vmem:[%s3940_s12 + $0x2] sm:$0x1] }
 0x603   :  { %v1433_v36 = vpop.f32.mrf.mxu2  ;;  %1756 = vmatpush.bf16.msra.mxu3 %v3201_v17  ;;  %v3212_v17 = vld [vmem:[%s3939_s13 + $0x18] sm:$0xff] }
 0x604   :  { %v2957_v36 = vld [vmem:[%s3938_s10 + $0x4] sm:$0x3] }
 0x607   :  { %1757 = vmatpush.bf16.msra.mxu3 %v3200_v18  ;;  %v3211_v18 = vld [vmem:[%s3939_s13 + $0x10] sm:$0xff] }
 0x66b   :  { %v1361_v42 = vpop.f32.mrf.mxu0  ;;  %v1413_v43 = vpop.f32.mrf.mxu1 }
 0x66c   :  { %v1414_v44 = vadd.f32 %v1413_v43, %v1361_v42  ;;  %v3203_v42 = vld [vmem:[%s3937_s11 + $0x30] sm:$0xff] }
 0x673   :  { %v1363_v45 = vpop.f32.mrf.mxu0  ;;  %v1415_v46 = vpop.f32.mrf.mxu1 }
 0x67b   :  { %v1516_v47 = vpop.f32.mrf.mxu0 }
 0x67c   :  { %v1520_v48 = vpack.c.bf16 %v1516_v47, %v1516_v47 }
 0x67e   :  { %2919 = vmatmul.msk.bf16.vlgmr.msrb.gmra.mxu1 %vm1348_vm4, %v1520_v48 }
 0x67f   :  { %1910 = vmatpush.bf16.msrb.mxu1 %v3208_v53  ;;  %v2200_v53 = vld [vmem:[%s3941_s14] sm:$0xff] }
 0x681   :  { %v1497_v49 = vpop.f32.mrf.mxu3 }
 0x682   :  { %v1501_v50 = vadd.f32 %v1497_v49, %v1414_v44  ;;  %v2978_v49 = vld [vmem:[%s3938_s10 + $0x6] sm:$0x3] }
 0x683   :  { %v1518_v51 = vpop.f32.mrf.mxu0  ;;  %1911 = vmatpush.bf16.msrb.mxu1 %v3207_v54 }
 0x687   :  { %1912 = vmatpush.bf16.msrb.mxu1 %v3206_v55 }
 0x689   :  { %v1499_v52 = vpop.f32.mrf.mxu3 }
 0x6fb   :  { %v1582_v59 = vpop.f32.mrf.mxu1 }
 0x6fc   :  { %v1586_v60 = vadd.f32 %v1582_v59, %v1501_v50 }
 0x6fe   :  { %v1594_v61 = vsel %vm1593_vm5, %v1586_v60, 0.0 }
 0x6ff   :  { %v1595_v62 = vrot.slane %v1594_v61, 4 }
 0x701   :  { %v1596_v63 = vadd.f32 %v1595_v62, %v1594_v61 }
 0x703   :  { %v1597_v0 = vrot.slane %v1596_v63, 2  ;;  %v1584_v1 = vpop.f32.mrf.mxu1 }
 0x705   :  { %v1598_v2 = vadd.f32 %v1597_v0, %v1596_v63 }
 0x707   :  { %v1599_v3 = vrot.slane %v1598_v2, 1 }
 0x709   :  { %v1600_v4 = vadd.f32 %v1599_v3, %v1598_v2 }
 0x70b   :  { %2920 = vmatmul.msk.f32.vlgmr.msra.gmra.mxu2 %vm1601_vm6, %v1600_v4  ;;  %v3215_v4 = vld [vmem:[%s3939_s13 + $0x30] sm:$0xff] }
 0x78e   :  { %v1622_v5 = vpop.f32.mrf.mxu2 }
 0x78f   :  { %v1625_v6 = vperm.slane %v1622_v5, 0  ;;  %v3214_v5 = vld [vmem:[%s3939_s13 + $0x28] sm:$0xff] }
 0x791   :  { %v1626_v7 = vsub.f32 %v1586_v60, %v1625_v6  ;;  %v3213_v6 = vld [vmem:[%s3939_s13 + $0x20] sm:$0xff] }
 0x793   :  { %v1627_v8 = vmul.f32 %v1626_v7, %v1626_v7 }
 0x795   :  { %v1628_v9 = vsel %vm1593_vm5, %v1627_v8, 0.0 }
 0x796   :  { %v1629_v10 = vrot.slane %v1628_v9, 4 }
 0x798   :  { %v1630_v11 = vadd.f32 %v1629_v10, %v1628_v9 }
 0x79a   :  { %v1631_v12 = vrot.slane %v1630_v11, 2 }
 0x79c   :  { %v1632_v13 = vadd.f32 %v1631_v12, %v1630_v11 }
 0x79e   :  { %v1633_v14 = vrot.slane %v1632_v13, 1 }
 0x7a0   :  { %v1634_v15 = vadd.f32 %v1633_v14, %v1632_v13  ;;  %v3000_v14 = vld [vmem:[%s3940_s12 + $0x1] sm:$0x1] }
 0x7a2   :  { %2921 = vmatmul.msk.f32.vlgmr.msrb.gmra.mxu3 %vm1601_vm6, %v1634_v15  ;;  %v1923_v15 = vld [vmem:[%s3940_s12] sm:$0x1] }
 0x825   :  { %v1655_v19 = vpop.f32.mrf.mxu3 }
 0x826   :  { %v1656_v20 = vadd.f32 1e-05, %v1655_v19  ;;  %v3210_v19 = vld [vmem:[%s3939_s13 + $0x8] sm:$0xff] }
 0x828   :  { %3226 = vrsqrt.f32 %v1656_v20  ;;  %vm1664_vm8 = vweird.f32 %v1656_v20 }
 0x82e   :  { %v3227_v21 = vpop.eup %3226 }
 0x82f   :  { %v1659_v22 = vmul.f32 %v3227_v21, %v1656_v20  ;;  %vm1665_vm7 = vweird.f32 %v3227_v21  ;;  %v3209_v20 = vld [vmem:[%s3939_s13] sm:$0xff] }
 0x830   :  { %vm1666_vm9 = vmor %vm1664_vm8, %vm1665_vm7 }
 0x831   :  { %v1660_v23 = vmul.f32 %v3227_v21, %v1659_v22  ;;  %v3219_v22 = vld [vmem:[%s3939_s13 + $0x50] sm:$0xff] }
 0x833   :  { %v1661_v24 = vmul.f32 0.5, %v1660_v23  ;;  %v3218_v23 = vld [vmem:[%s3939_s13 + $0x48] sm:$0xff] }
 0x835   :  { %v1662_v25 = vsub.f32 1.5, %v1661_v24  ;;  %v3217_v24 = vld [vmem:[%s3939_s13 + $0x40] sm:$0xff] }
 0x837   :  { %v1663_v26 = vmul.f32 %v3227_v21, %v1662_v25 }
 0x839   :  { %v1667_v27 = vsel %vm1666_vm9, %v3227_v21, %v1663_v26  ;;  %v3220_v21 = vld [vmem:[%s3939_s13 + $0x58] sm:$0xff] }
 0x83a   :  { %v1668_v28 = vperm.slane %v1667_v27, 0 }
 0x83c   :  { %v1669_v29 = vmul.f32 %v1668_v28, %v1626_v7 }
 0x83e   :  { %vm1670_vm10 = vcmp.ge.f32.partialorder %v1669_v29, 0.0  ;;  %v1671_v30 = vmul.f32 0.2, %v1669_v29 }
 0x840   :  { %v1672_v31 = vsel %vm1670_vm10, %v1669_v29, %v1671_v30  ;;  %vm2337_vm10 = vcmask 1024  }
 0x841   :  { %v1673_v32 = vpack.c.bf16 %v1672_v31, %v1672_v31  ;;  %v3071_v31 = vld [vmem:[%s3940_s12 + $0x3] sm:$0x1] }
 0x843   :  { %v1681_v33 = vsel %vm1679_vm11, %v1673_v32, 0 }
 0x844   :  { %1690 = vmatpush.bf16.msrb.mxu2 %v1681_v33  ;;  %1715 = vmatpush.bf16.msrb.mxu0 %v1681_v33 }
 0x845   :  { %1870 = vmatpush.bf16.msrb.mxu3 %v1681_v33 }
 0x847   :  { %2922 = vmatmul.msk.bf16.vlgmr.msrb.gmra.mxu2 %vm1675_vm12, %v1674_v34  ;;  %2924 = vmatmul.msk.bf16.vlgmr.msrb.gmra.mxu0 %vm1675_vm12, %v2923_v35  ;;  %v3224_v35 = vld [vmem:[%s3939_s13 + $0x78] sm:$0xff] }
 0x848   :  { %1809 = vmatpush.bf16.msra.mxu2 %v1681_v33  ;;  %1849 = vmatpush.bf16.msra.mxu0 %v3205_v40 }
 0x84c   :  { %1850 = vmatpush.bf16.msra.mxu0 %v3204_v41 }
 0x850   :  { %1851 = vmatpush.bf16.msra.mxu0 %v3203_v42 }
 0x857   :  { %2958 = vmatmul.msk.bf16.vlgmr.msra.gmra.mxu2 %vm1675_vm12, %v2957_v36  ;;  %v3223_v36 = vld [vmem:[%s3939_s13 + $0x70] sm:$0xff] }
 0x8c4   :  { %v1717_v43 = vpop.f32.mrf.mxu0 }
 0x8c5   :  { %v1721_v44 = vpack.c.bf16 %v1717_v43, %v1717_v43 }
 0x8c7   :  { %2943 = vmatmul.msk.bf16.vlgmr.msra.gmra.mxu3 %vm1601_vm6, %v1721_v44 }
 0x8c8   :  { %2013 = vmatpush.bf16.msra.mxu3 %v3216_v56 }
 0x8ca   :  { %v1692_v45 = vpop.f32.mrf.mxu2 }
 0x8cb   :  { %v1696_v46 = vpack.c.bf16 %v1692_v45, %v1692_v45 }
 0x8cc   :  { %v1719_v47 = vpop.f32.mrf.mxu0  ;;  %2014 = vmatpush.bf16.msra.mxu3 %v3215_v4 }
 0x8cd   :  { %2956 = vmatmul.msk.bf16.vlgmr.msra.gmra.mxu1 %vm1601_vm6, %v1696_v46 }
 0x8ce   :  { %2053 = vmatpush.bf16.msra.mxu1 %v3212_v17 }
 0x8d0   :  { %2015 = vmatpush.bf16.msra.mxu3 %v3214_v5 }
 0x8d2   :  { %v1694_v48 = vpop.f32.mrf.mxu2  ;;  %2054 = vmatpush.bf16.msra.mxu1 %v3211_v18 }
 0x8d4   :  { %2016 = vmatpush.bf16.msra.mxu3 %v3213_v6 }
 0x8d6   :  { %2055 = vmatpush.bf16.msra.mxu1 %v3210_v19 }
 0x8d7   :  { %2979 = vmatmul.msk.bf16.vlgmr.msrb.gmra.mxu3 %vm1675_vm12, %v2978_v49 }
 0x8da   :  { %v1811_v50 = vpop.f32.mrf.mxu2  ;;  %2056 = vmatpush.bf16.msra.mxu1 %v3209_v20 }
 0x8db   :  { %v1815_v51 = vpack.c.bf16 %v1811_v50, %v1811_v50  ;;  %v2203_v50 = vld [vmem:[%s3941_s14 + $0x18] sm:$0xff] }
 0x8dd   :  { %2977 = vmatmul.msk.bf16.vlgmr.msra.gmra.mxu0 %vm1601_vm6, %v1815_v51  ;;  %v2202_v51 = vld [vmem:[%s3941_s14 + $0x10] sm:$0xff] }
 0x8e2   :  { %v1813_v52 = vpop.f32.mrf.mxu2 }
 0x8e3   :  { %v2201_v52 = vld [vmem:[%s3941_s14 + $0x8] sm:$0xff] }
 0x94a   :  { %v1759_v57 = vpop.f32.mrf.mxu3  ;;  %v1793_v58 = vpop.f32.mrf.mxu1 }
 0x94b   :  { %v1794_v59 = vadd.f32 %v1793_v58, %v1759_v57 }
 0x952   :  { %v1761_v60 = vpop.f32.mrf.mxu3  ;;  %v1795_v61 = vpop.f32.mrf.mxu1 }
 0x95a   :  { %v1853_v62 = vpop.f32.mrf.mxu0  ;;  %v1872_v63 = vpop.f32.mrf.mxu3 }
 0x95b   :  { %v1857_v0 = vadd.f32 %v1853_v62, %v1794_v59  ;;  %v1876_v1 = vpack.c.bf16 %v1872_v63, %v1872_v63 }
 0x95d   :  { %2998 = vmatmul.msk.bf16.vlgmr.msrb.gmra.mxu1 %vm1601_vm6, %v1876_v1 }
 0x95e   :  { %2190 = vmatpush.bf16.msrb.mxu1 %v3224_v35 }
 0x962   :  { %v1874_v2 = vpop.f32.mrf.mxu3  ;;  %v1855_v3 = vpop.f32.mrf.mxu0  ;;  %2191 = vmatpush.bf16.msrb.mxu1 %v3223_v36 }
 0x966   :  { %2192 = vmatpush.bf16.msrb.mxu1 %v3222_v37 }
 0x96a   :  { %2193 = vmatpush.bf16.msrb.mxu1 %v3221_v38 }
 0x9da   :  { %v1914_v7 = vpop.f32.mrf.mxu1 }
 0x9db   :  { %v1918_v8 = vadd.f32 %v1914_v7, %v1857_v0 }
 0x9dd   :  { %vm1919_vm13 = vcmp.ge.f32.partialorder %v1918_v8, 0.0  ;;  %v1920_v9 = vmul.f32 0.2, %v1918_v8 }
 0x9df   :  { %v1921_v10 = vsel %vm1919_vm13, %v1918_v8, %v1920_v9 }
 0x9e0   :  { %v1922_v11 = vpack.c.bf16 %v1921_v10, %v1921_v10 }
 0x9e2   :  { %v1930_v12 = vsel %vm1928_vm14, %v1922_v11, 0  ;;  %v1916_v13 = vpop.f32.mrf.mxu1  ;;  %v2286_v11 = vld [vmem:[%s3942_s15 + $0x18] sm:$0xff] }
 0x9e3   :  { %1939 = vmatpush.bf16.msrb.mxu2 %v1930_v12  ;;  %1966 = vmatpush.bf16.msrb.mxu0 %v1930_v12  ;;  %v2284_v13 = vld [vmem:[%s3942_s15 + $0x8] sm:$0xff] }
 0x9e4   :  { %2143 = vmatpush.bf16.msrb.mxu3 %v1930_v12 }
 0x9e6   :  { %3001 = vmatmul.msk.bf16.vlgmr.msrb.gmra.mxu0 %vm1924_vm15, %v3000_v14  ;;  %2999 = vmatmul.msk.bf16.vlgmr.msrb.gmra.mxu2 %vm1924_vm15, %v1923_v15  ;;  %v2283_v14 = vld [vmem:[%s3942_s15] sm:$0xff]  ;;  %v22_v15 = vstv %s3943_s16 }
 0x9e7   :  { %2074 = vmatpush.bf16.msra.mxu2 %v1930_v12  ;;  %2121 = vmatpush.bf16.msra.mxu0 %v3220_v21  ;;  %v2285_v12 = vld [vmem:[%s3942_s15 + $0x10] sm:$0xff]  ;;  %23 = vst [vmem:[#allocation2] sm:$0x1] %v22_v15 }
 0x9eb   :  { %2122 = vmatpush.bf16.msra.mxu0 %v3219_v22  ;;  %2227 = vmatpush.msrb.mxu2 %v2203_v50 }
 0x9ed   :  { %2228 = vmatpush.msrb.mxu2 %v2202_v51 }
 0x9ef   :  { %2123 = vmatpush.bf16.msra.mxu0 %v3218_v23  ;;  %2229 = vmatpush.msrb.mxu2 %v2201_v52 }
 0x9f1   :  { %2230 = vmatpush.msrb.mxu2 %v2200_v53 }
 0x9f3   :  { %2124 = vmatpush.bf16.msra.mxu0 %v3217_v24 }
 0x9f6   :  { %3045 = vmatmul.msk.bf16.vlgmr.msra.gmra.mxu2 %vm1924_vm15, %v3044_v16 }
 0x9f7   :  { %2260 = vmatpush.msrb.mxu0 %v2203_v50  ;;  %2306 = vmatpush.msra.mxu2 %v2286_v11 }
 0x9f9   :  { %2261 = vmatpush.msrb.mxu0 %v2202_v51  ;;  %2307 = vmatpush.msra.mxu2 %v2285_v12 }
 0x9fb   :  { %2262 = vmatpush.msrb.mxu0 %v2201_v52  ;;  %2308 = vmatpush.msra.mxu2 %v2284_v13 }
 0x9fd   :  { %2263 = vmatpush.msrb.mxu0 %v2200_v53  ;;  %2309 = vmatpush.msra.mxu2 %v2283_v14 }
 0xa63   :  { %v1968_v25 = vpop.f32.mrf.mxu0 }
 0xa64   :  { %v1972_v26 = vpack.c.bf16 %v1968_v25, %v1968_v25 }
 0xa66   :  { %3026 = vmatmul.msk.bf16.vlgmr.msra.gmra.mxu3 %vm190_vm1, %v1972_v26 }
 0xa69   :  { %v1941_v27 = vpop.f32.mrf.mxu2 }
 0xa6a   :  { %v1945_v28 = vpack.c.bf16 %v1941_v27, %v1941_v27 }
 0xa6b   :  { %v1970_v29 = vpop.f32.mrf.mxu0 }
 0xa6c   :  { %3043 = vmatmul.msk.bf16.vlgmr.msra.gmra.mxu1 %vm190_vm1, %v1945_v28  ;;  %v3225_v29 = vld [vmem:[#allocation2] ss:$0 sm:$0xff] }
 0xa71   :  { %v1943_v30 = vpop.f32.mrf.mxu2 }
 0xa76   :  { %3072 = vmatmul.msk.bf16.vlgmr.msrb.gmra.mxu3 %vm1924_vm15, %v3071_v31 }
 0xa79   :  { %v2076_v32 = vpop.f32.mrf.mxu2 }
 0xa7a   :  { %v2080_v33 = vpack.c.bf16 %v2076_v32, %v2076_v32 }
 0xa7c   :  { %3070 = vmatmul.msk.bf16.vlgmr.msra.gmra.mxu0 %vm190_vm1, %v2080_v33 }
 0xa81   :  { %v2078_v34 = vpop.f32.mrf.mxu2 }
 0xae9   :  { %v2018_v39 = vpop.f32.mrf.mxu3  ;;  %v2058_v40 = vpop.f32.mrf.mxu1 }
 0xaea   :  { %v2059_v41 = vadd.f32 %v2058_v40, %v2018_v39 }
 0xaf1   :  { %v2020_v42 = vpop.f32.mrf.mxu3  ;;  %v2060_v43 = vpop.f32.mrf.mxu1 }
 0xaf9   :  { %v2145_v44 = vpop.f32.mrf.mxu3  ;;  %v2126_v45 = vpop.f32.mrf.mxu0 }
 0xafa   :  { %v2149_v46 = vpack.c.bf16 %v2145_v44, %v2145_v44  ;;  %v2130_v47 = vadd.f32 %v2126_v45, %v2059_v41 }
 0xafc   :  { %3097 = vmatmul.msk.bf16.vlgmr.msrb.gmra.mxu1 %vm190_vm1, %v2149_v46  ;;  %vm2204_vm1 = vcmask 254976  }
 0xb01   :  { %v2147_v48 = vpop.f32.mrf.mxu3  ;;  %v2128_v49 = vpop.f32.mrf.mxu0 }
 0xb79   :  { %v2195_v54 = vpop.f32.mrf.mxu1 }
 0xb7a   :  { %v2199_v55 = vadd.f32 %v2195_v54, %v2130_v47 }
 0xb7c   :  { %v2205_v56 = vsel %vm2204_vm1, %v2199_v55, 0.0 }
 0xb7d   :  { %v2206_v57 = vrot.slane %v2205_v56, 4 }
 0xb7f   :  { %v2207_v58 = vadd.f32 %v2206_v57, %v2205_v56 }
 0xb81   :  { %v2208_v59 = vrot.slane %v2207_v58, 2  ;;  %v2197_v60 = vpop.f32.mrf.mxu1 }
 0xb83   :  { %v2209_v61 = vadd.f32 %v2208_v59, %v2207_v58 }
 0xb85   :  { %v2210_v62 = vrot.slane %v2209_v61, 1 }
 0xb87   :  { %v2211_v63 = vadd.f32 %v2210_v62, %v2209_v61 }
 0xb89   :  { %3098 = vmatmul.msk.f32.vlgmr.msrb.gmra.mxu2 %vm79_vm0, %v2211_v63 }
 0xc0c   :  { %v2232_v0 = vpop.f32.mrf.mxu2 }
 0xc0d   :  { %v2235_v1 = vperm.slane %v2232_v0, 0 }
 0xc0f   :  { %v2236_v2 = vsub.f32 %v2199_v55, %v2235_v1 }
 0xc11   :  { %v2237_v3 = vmul.f32 %v2236_v2, %v2236_v2 }
 0xc13   :  { %v2238_v4 = vsel %vm2204_vm1, %v2237_v3, 0.0 }
 0xc14   :  { %v2239_v5 = vrot.slane %v2238_v4, 4 }
 0xc16   :  { %v2240_v6 = vadd.f32 %v2239_v5, %v2238_v4 }
 0xc18   :  { %v2241_v7 = vrot.slane %v2240_v6, 2 }
 0xc1a   :  { %v2242_v8 = vadd.f32 %v2241_v7, %v2240_v6 }
 0xc1c   :  { %v2243_v9 = vrot.slane %v2242_v8, 1 }
 0xc1e   :  { %v2244_v10 = vadd.f32 %v2243_v9, %v2242_v8 }
 0xc20   :  { %3099 = vmatmul.msk.f32.vlgmr.msrb.gmra.mxu0 %vm79_vm0, %v2244_v10 }
 0xc9d   :  { %v2265_v16 = vpop.f32.mrf.mxu0 }
 0xc9e   :  { %v2266_v17 = vadd.f32 1e-05, %v2265_v16 }
 0xca0   :  { %3228 = vrsqrt.f32 %v2266_v17  ;;  %vm2274_vm3 = vweird.f32 %v2266_v17 }
 0xca6   :  { %v3229_v18 = vpop.eup %3228 }
 0xca7   :  { %v2269_v19 = vmul.f32 %v3229_v18, %v2266_v17  ;;  %vm2275_vm2 = vweird.f32 %v3229_v18 }
 0xca8   :  { %vm2276_vm4 = vmor %vm2274_vm3, %vm2275_vm2 }
 0xca9   :  { %v2270_v20 = vmul.f32 %v3229_v18, %v2269_v19 }
 0xcab   :  { %v2271_v21 = vmul.f32 0.5, %v2270_v20 }
 0xcad   :  { %v2272_v22 = vsub.f32 1.5, %v2271_v21 }
 0xcaf   :  { %v2273_v23 = vmul.f32 %v3229_v18, %v2272_v22 }
 0xcb1   :  { %v2277_v24 = vsel %vm2276_vm4, %v3229_v18, %v2273_v23 }
 0xcb2   :  { %v2278_v25 = vperm.slane %v2277_v24, 0 }
 0xcb4   :  { %v2279_v26 = vmul.f32 %v2278_v25, %v2236_v2 }
 0xcb6   :  { %vm2280_vm5 = vcmp.ge.f32.partialorder %v2279_v26, 0.0  ;;  %v2281_v27 = vmul.f32 0.2, %v2279_v26 }
 0xcb8   :  { %v2282_v28 = vsel %vm2280_vm5, %v2279_v26, %v2281_v27 }
 0xcb9   :  { %3100 = vmatmul.msk.f32.vlgmr.msra.gmra.mxu2 %vm79_vm0, %v2282_v28 }
 0xd3c   :  { %v2311_v30 = vpop.f32.mrf.mxu2 }
 0xd3d   :  { %v2312_v31 = vadd.f32 %v3225_v29, %v2311_v30 }
 0xd3f   :  { %vm2314_vm6 = vcmp.ge.f32.partialorder %v2312_v31, 0.0  ;;  %v2315_v32 = vsub.f32 0.0, %v2312_v31 }
 0xd41   :  { %v2316_v33 = vsel %vm2314_vm6, %v2315_v32, %v2312_v31 }
 0xd42   :  { %v2317_v34 = vmul.f32 1.442695, %v2316_v33 }
 0xd44   :  { %3230 = vpow2.f32 %v2317_v34 }
 0xd4a   :  { %v3231_v35 = vpop.eup %3230 }
 0xd4b   :  { %v2319_v36 = vadd.f32 1.0, %v3231_v35 }
 0xd4d   :  { %3232 = vrcp.f32 %v2319_v36  ;;  %v2331_v40 = vand.u32 2147483648, %v2319_v36  ;;  %v2329_v42 = vand.u32 2147483647, %v2319_v36  ;;  %vm2325_vm0 = vweird.f32 %v2319_v36 }
 0xd4f   :  { %v2332_v44 = vor.u32 1.1754944e-38, %v2331_v40  ;;  %vm2330_vm9 = vcmp.eq.f32.partialorder %v2329_v42, 8.507059e+37 }
 0xd53   :  { %v3233_v37 = vpop.eup %3232 }
 0xd54   :  { %v2321_v38 = vmul.f32 %v3233_v37, %v2319_v36  ;;  %vm2326_vm7 = vweird.f32 %v3233_v37 }
 0xd55   :  { %vm2327_vm8 = vmor %vm2325_vm0, %vm2326_vm7 }
 0xd56   :  { %v2322_v39 = vsub.f32 1.0, %v2321_v38 }
 0xd58   :  { %v2323_v41 = vmul.f32 %v3233_v37, %v2322_v39 }
 0xd5a   :  { %v2324_v43 = vadd.f32 %v3233_v37, %v2323_v41 }
 0xd5c   :  { %v2328_v45 = vsel %vm2327_vm8, %v3233_v37, %v2324_v43 }
 0xd5d   :  { %v2333_v46 = vsel %vm2330_vm9, %v2332_v44, %v2328_v45 }
 0xd5e   :  { %v2335_v47 = vmul.f32 %v3231_v35, %v2333_v46 }
 0xd60   :  { %v2336_v48 = vsel %vm2314_vm6, %v2333_v46, %v2335_v47 }
 0xd61   :  { %2338 = vst.msk [vmem:[%s3944_s17] sm:$0x3] %vm2337_vm10, %v2336_v48 }

</bundles_post_ra>
